<compile_context>
chip_gen: v6e
topology: v6e:2x2x1
jax: 0.10.0
libtpu: 0.0.40
codegen_flags: <defaults>
</compile_context>

<pallas_src>
import functools

import jax
import jax.numpy as jnp
from jax import lax
from jax.experimental import pallas as pl
from jax.experimental.pallas import tpu as pltpu

LN_EPS = 1e-5
F32 = jnp.float32
BF16 = jnp.bfloat16


# ----------------------------------------------------------------------------
# Fused kernel body: one NodeBlock (+ shared lin_node residual) per grid step.
# ----------------------------------------------------------------------------
def _fused_block_kernel(
        col_ref,                                   # scalar prefetch: (E,) int32, SMEM
        ef_ref, x0_ref, wedge_ref, bedge_ref,      # shared inputs (fetched once)
        wx_ref, nnb1_ref, nnw2_ref, nnb2_ref, cb_ref,
        we_ref, enb1_ref, enw2_ref, enb2_ref,
        msgw_ref, msgb_ref, gb1_ref, gw2_ref, gb2_ref,
        lng_ref, lnb_ref, ow_ref, ob_ref,
        linw_ref, linb_ref,
        out_ref,                                   # (N, Dn) written at last block
        ea_ref, x_ref, nhxg_ref, gath_ref, msg_ref,  # VMEM scratch (persist over grid)
        *, k):
    b = pl.program_id(0)
    N, _ = out_ref.shape
    E = ea_ref.shape[0]
    H = msgw_ref.shape[-1]

    # b == 0: init resident node state + loop-invariant edge embedding
    # (single fused dot over the [gaussian smear | type one-hot] slab).
    @pl.when(b == 0)
    def _init():
        x_ref[...] = x0_ref[...]
        ea_ref[...] = (jnp.dot(ef_ref[...].astype(BF16), wedge_ref[...],
                               preferred_element_type=F32) + bedge_ref[...])

    x = x_ref[...]                                     # (N, Dn) f32 carried state
    ea = ea_ref[...]                                   # (E, De) f32
    x_b = x.astype(BF16)
    ea_b = ea.astype(BF16)

    # ---- node side: merged [node_net.l1 | centroid_lin | gate x-chunk] ------
    xw = jnp.dot(x_b, wx_ref[0], preferred_element_type=F32)          # (N, 3H)
    nh1 = jnp.maximum(xw[:, :H] + nnb1_ref[0], 0.0)
    node_h = (jnp.dot(nh1.astype(BF16), nnw2_ref[0],
                      preferred_element_type=F32) + nnb2_ref[0])      # (N, H)
    cent = xw[:, H:2 * H] + cb_ref[0]                                 # centroid_lin(x)
    xg = xw[:, 2 * H:]                                                # x @ g_wx

    # stash [node_h | x@g_wx] contiguously (no lane concat) for the row gather
    nhxg_ref[:, :H] = node_h
    nhxg_ref[:, H:] = xg

    # ---- edge side: merged [edge_net.l1 | gate edge-chunk] ------------------
    eaw = jnp.dot(ea_b, we_ref[0], preferred_element_type=F32)        # (E, 2H)
    eh1 = jnp.maximum(eaw[:, :H] + enb1_ref[0], 0.0)
    edge_h = (jnp.dot(eh1.astype(BF16), enw2_ref[0],
                      preferred_element_type=F32) + enb2_ref[0])      # (E, H)
    g_e = eaw[:, H:]

    # ---- index-driven row gather: gath[e] = [node_h | x@g_wx][col[e]] -------
    def gather_body(e, carry):
        gath_ref[e] = nhxg_ref[col_ref[e]]
        return carry
    lax.fori_loop(0, E, gather_body, 0)

    gath = gath_ref[...]                                              # (E, 2H) f32
    nh_col = gath[:, :H]
    xg_col = gath[:, H:]

    msg = (jnp.dot((edge_h * nh_col).astype(BF16), msgw_ref[0],
                   preferred_element_type=F32) + msgb_ref[0])
    # gate = MLP(cat([edge_attr, x[col], node_time[col]])); node_time == 0 -> dropped
    gh = jnp.maximum(g_e + xg_col + gb1_ref[0], 0.0)
    gate = (jnp.dot(gh.astype(BF16), gw2_ref[0],
                    preferred_element_type=F32) + gb2_ref[0])
    msg_ref[...] = msg * jax.nn.sigmoid(gate)

    # ---- scatter_sum(msg, row, dim_size=N):
    # edges are ordered so edge j*N + n targets centre node n, hence the segment
    # sum is k contiguous, sublane-aligned (N, H) row-block adds.
    aggr = msg_ref[pl.ds(0, N), :]
    for j in range(1, k):
        aggr = aggr + msg_ref[pl.ds(j * N, N), :]

    out = cent + aggr
    # LayerNorm (eps=1e-5, biased variance, like torch)
    mean = jnp.mean(out, axis=-1, keepdims=True)
    var = jnp.mean((out - mean) ** 2, axis=-1, keepdims=True)
    out = (out - mean) * lax.rsqrt(var + LN_EPS) * lng_ref[0] + lnb_ref[0]
    out = jnp.maximum(out, 0.0)
    nbe = (jnp.dot(out.astype(BF16), ow_ref[0],
                   preferred_element_type=F32) + ob_ref[0])

    # NodeBondNet residual: node_h = node_h + lin_node(node_h_with_edge)
    new_x = x + (jnp.dot(nbe.astype(BF16), linw_ref[...],
                         preferred_element_type=F32) + linb_ref[...])
    x_ref[...] = new_x

    @pl.when(b == pl.num_programs(0) - 1)
    def _finalize():
        out_ref[...] = new_x


# ----------------------------------------------------------------------------
# Parameter setup (deterministic, PyTorch-Linear-style uniform init)
# ----------------------------------------------------------------------------
def _linear(key, fan_in, fan_out):
    kw, kb = jax.random.split(key)
    bound = 1.0 / float(fan_in) ** 0.5
    w = jax.random.uniform(kw, (fan_in, fan_out), F32, -bound, bound)
    b = jax.random.uniform(kb, (1, fan_out), F32, -bound, bound)
    return w, b


def init_params(key, node_dim, edge_dim, hidden_dim, num_blocks, cutoff, num_gauss=20):
    ks = jax.random.split(key, 2 + 9 * num_blocks)
    edge_w, edge_b = _linear(ks[0], num_gauss + 6, edge_dim)   # additional_edge_feat = 6
    lin_w, lin_b = _linear(ks[1], node_dim, node_dim)
    offsets = jnp.linspace(0.0, cutoff, num_gauss).reshape(1, num_gauss).astype(F32)
    coeff = -0.5 / (float(cutoff) / (num_gauss - 1)) ** 2       # GaussianSmearing coeff

    blocks, idx = [], 2
    for _ in range(num_blocks):
        bk = ks[idx:idx + 9]; idx += 9
        nn_w1, nn_b1 = _linear(bk[0], node_dim, hidden_dim)
        nn_w2, nn_b2 = _linear(bk[1], hidden_dim, hidden_dim)
        en_w1, en_b1 = _linear(bk[2], edge_dim, hidden_dim)
        en_w2, en_b2 = _linear(bk[3], hidden_dim, hidden_dim)
        msg_w, msg_b = _linear(bk[4], hidden_dim, hidden_dim)
        gw1, g_b1 = _linear(bk[5], edge_dim + node_dim + 1, hidden_dim)
        g_w2, g_b2 = _linear(bk[6], hidden_dim, hidden_dim)
        c_w, c_b = _linear(bk[7], node_dim, hidden_dim)
        o_w, o_b = _linear(bk[8], hidden_dim, node_dim)
        blocks.append(dict(
            nn_w1=nn_w1, nn_b1=nn_b1, nn_w2=nn_w2, nn_b2=nn_b2,
            en_w1=en_w1, en_b1=en_b1, en_w2=en_w2, en_b2=en_b2,
            msg_w=msg_w, msg_b=msg_b,
            g_we=gw1[:edge_dim], g_wx=gw1[edge_dim:edge_dim + node_dim],
            g_wt=gw1[edge_dim + node_dim:],  # unused: node_time is identically zero
            g_b1=g_b1, g_w2=g_w2, g_b2=g_b2,
            c_w=c_w, c_b=c_b,
            ln_g=jnp.ones((1, hidden_dim), F32),
            ln_b=jnp.zeros((1, hidden_dim), F32),
            o_w=o_w, o_b=o_b))
    return dict(edge_w=edge_w, edge_b=edge_b, offsets=offsets, coeff=coeff,
                lin_w=lin_w, lin_b=lin_b, blocks=blocks, num_gauss=num_gauss)


def prepare_kernel_params(params):
    """Merge shared-LHS weights, stack per-block params on a leading B axis,
    and pre-cast MXU weights to bf16 (biases / LN params stay f32)."""
    blocks = params["blocks"]
    s32 = lambda n: jnp.stack([p[n] for p in blocks]).astype(F32)
    s16 = lambda n: jnp.stack([p[n] for p in blocks]).astype(BF16)
    wx = jnp.stack([jnp.concatenate([p["nn_w1"], p["c_w"], p["g_wx"]], axis=1)
                    for p in blocks]).astype(BF16)                    # (B, Dn, 3H)
    we = jnp.stack([jnp.concatenate([p["en_w1"], p["g_we"]], axis=1)
                    for p in blocks]).astype(BF16)                    # (B, De, 2H)
    return dict(
        w_edge=params["edge_w"].astype(BF16), b_edge=params["edge_b"],
        wx=wx, nn_b1=s32("nn_b1"), nn_w2=s16("nn_w2"), nn_b2=s32("nn_b2"),
        c_b=s32("c_b"),
        we=we, en_b1=s32("en_b1"), en_w2=s16("en_w2"), en_b2=s32("en_b2"),
        msg_w=s16("msg_w"), msg_b=s32("msg_b"),
        g_b1=s32("g_b1"), g_w2=s16("g_w2"), g_b2=s32("g_b2"),
        ln_g=s32("ln_g"), ln_b=s32("ln_b"),
        o_w=s16("o_w"), o_b=s32("o_b"),
        lin_w=params["lin_w"].astype(BF16), lin_b=params["lin_b"])


# ----------------------------------------------------------------------------
# Wrapper glue: knn edges, gaussian smearing + type one-hots (matches torch
# _build_edges), then one fused pallas_call over the block grid.
# ----------------------------------------------------------------------------
def build_edge_inputs(pos, batch, is_mol, is_frag, params, k):
    """knn_graph stand-in + edge feature slab.  Edge j*N + n is centre n's j-th
    neighbour, so the in-kernel scatter_sum over centres is k contiguous
    row-block adds.  Requires every graph to have > k nodes."""
    N = pos.shape[0]
    d2 = jnp.sum((pos[:, None, :] - pos[None, :, :]) ** 2, axis=-1)
    valid = (batch[:, None] == batch[None, :]) & ~jnp.eye(N, dtype=bool)
    d2 = jnp.where(valid, d2, jnp.inf)
    nbr = jnp.argsort(d2, axis=-1)[:, :k]                    # (N, k)
    row = jnp.tile(jnp.arange(N), k).astype(jnp.int32)       # centre node
    col = nbr.T.reshape(-1).astype(jnp.int32)                # neighbour (message src)
    edge_index = jnp.stack([row, col])
    d = jnp.linalg.norm(pos[row] - pos[col], axis=-1, keepdims=True)
    smear = jnp.exp(params["coeff"] * (d - params["offsets"]) ** 2)   # (E, G)
    src = is_mol[row] + 2 * is_frag[row]   # assumes flags mutually exclusive
    dst = is_mol[col] + 2 * is_frag[col]
    etype = jnp.concatenate([jax.nn.one_hot(src, 3, dtype=F32),
                             jax.nn.one_hot(dst, 3, dtype=F32)], axis=-1)
    edge_feat = jnp.concatenate([smear, etype], axis=-1)     # (E, G + 6)
    return edge_index, edge_feat


def node_bond_net_forward(h, pos, batch, is_mol, is_frag, params, kparams, *, k):
    N, node_dim = h.shape
    edge_index, edge_feat = build_edge_inputs(pos, batch, is_mol, is_frag, params, k)
    col = edge_index[1]
    E, g6 = edge_feat.shape
    assert E == N * k
    B = int(kparams["wx"].shape[0])
    H = int(kparams["nn_w2"].shape[-1])
    De = int(kparams["b_edge"].shape[-1])

    def shared_spec(shape):
        return pl.BlockSpec(tuple(shape), lambda b, c: (0,) * len(shape))

    def block_spec(shape):
        return pl.BlockSpec((1,) + tuple(shape[1:]),
                            lambda b, c: (b,) + (0,) * (len(shape) - 1))

    in_specs = [
        shared_spec(edge_feat.shape), shared_spec(h.shape),
        shared_spec(kparams["w_edge"].shape), shared_spec(kparams["b_edge"].shape),
        block_spec(kparams["wx"].shape), block_spec(kparams["nn_b1"].shape),
        block_spec(kparams["nn_w2"].shape), block_spec(kparams["nn_b2"].shape),
        block_spec(kparams["c_b"].shape),
        block_spec(kparams["we"].shape), block_spec(kparams["en_b1"].shape),
        block_spec(kparams["en_w2"].shape), block_spec(kparams["en_b2"].shape),
        block_spec(kparams["msg_w"].shape), block_spec(kparams["msg_b"].shape),
        block_spec(kparams["g_b1"].shape), block_spec(kparams["g_w2"].shape),
        block_spec(kparams["g_b2"].shape),
        block_spec(kparams["ln_g"].shape), block_spec(kparams["ln_b"].shape),
        block_spec(kparams["o_w"].shape), block_spec(kparams["o_b"].shape),
        shared_spec(kparams["lin_w"].shape), shared_spec(kparams["lin_b"].shape),
    ]
    out_spec = pl.BlockSpec((N, node_dim), lambda b, c: (0, 0))
    scratch = [
        pltpu.VMEM((E, De), F32),        # ea: loop-invariant edge embedding
        pltpu.VMEM((N, node_dim), F32),  # carried node state
        pltpu.VMEM((N, 2 * H), F32),     # [node_h | x@g_wx] gather source slab
        pltpu.VMEM((E, 2 * H), F32),     # gathered rows
        pltpu.VMEM((E, H), F32),         # gated messages (scatter source)
    ]

    operands = (col, edge_feat, h,
                kparams["w_edge"], kparams["b_edge"],
                kparams["wx"], kparams["nn_b1"], kparams["nn_w2"], kparams["nn_b2"],
                kparams["c_b"],
                kparams["we"], kparams["en_b1"], kparams["en_w2"], kparams["en_b2"],
                kparams["msg_w"], kparams["msg_b"], kparams["g_b1"], kparams["g_w2"],
                kparams["g_b2"],
                kparams["ln_g"], kparams["ln_b"], kparams["o_w"], kparams["o_b"],
                kparams["lin_w"], kparams["lin_b"])

    flops = int(2 * E * g6 * De
                + B * 2 * (N * node_dim * 3 * H + N * H * H + E * De * 2 * H
                           + 3 * E * H * H + N * H * node_dim + N * node_dim * node_dim))
    transcendentals = int(B * E * H)                       # sigmoid
    bytes_accessed = int(sum(int(a.size) * a.dtype.itemsize for a in operands)
                         + N * node_dim * 4)

    grid_spec = pltpu.PrefetchScalarGridSpec(
        num_scalar_prefetch=1, grid=(B,),
        in_specs=in_specs, out_specs=out_spec, scratch_shapes=scratch)

    kernel = functools.partial(_fused_block_kernel, k=k)
    return pl.pallas_call(
        kernel,
        out_shape=jax.ShapeDtypeStruct((N, node_dim), F32),
        grid_spec=grid_spec,
        compiler_params=pltpu.CompilerParams(dimension_semantics=("arbitrary",)),
        cost_estimate=pl.CostEstimate(flops=flops, transcendentals=transcendentals,
                                      bytes_accessed=bytes_accessed),
    )(*operands)


# ----------------------------------------------------------------------------
# Pure-JAX reference (same math; matmuls emulate the kernel's bf16-in/f32-acc
# precision so the structural check is tight; set matmul_dtype=f32 for the
# exact-PyTorch-precision variant).
# ----------------------------------------------------------------------------
def ref_forward(h, edge_feat, edge_index, params, matmul_dtype=BF16):
    def mm(a, w):
        return jnp.dot(a.astype(matmul_dtype), w.astype(matmul_dtype),
                       preferred_element_type=F32)
    N = h.shape[0]
    row, col = edge_index[0], edge_index[1]
    ea = mm(edge_feat, params["edge_w"]) + params["edge_b"]
    for p in params["blocks"]:
        node_h = mm(jnp.maximum(mm(h, p["nn_w1"]) + p["nn_b1"], 0.0),
                    p["nn_w2"]) + p["nn_b2"]
        edge_h = mm(jnp.maximum(mm(ea, p["en_w1"]) + p["en_b1"], 0.0),
                    p["en_w2"]) + p["en_b2"]
        msg = mm(edge_h * node_h[col], p["msg_w"]) + p["msg_b"]
        gh = jnp.maximum(mm(ea, p["g_we"]) + mm(h, p["g_wx"])[col] + p["g_b1"], 0.0)
        gate = mm(gh, p["g_w2"]) + p["g_b2"]
        msg = msg * jax.nn.sigmoid(gate)
        aggr = jnp.zeros((N, msg.shape[1]), F32).at[row].add(msg)
        out = mm(h, p["c_w"]) + p["c_b"] + aggr
        mean = out.mean(-1, keepdims=True)
        var = ((out - mean) ** 2).mean(-1, keepdims=True)
        out = (out - mean) * jax.lax.rsqrt(var + LN_EPS) * p["ln_g"] + p["ln_b"]
        nbe = mm(jnp.maximum(out, 0.0), p["o_w"]) + p["o_b"]
        h = h + mm(nbe, params["lin_w"]) + params["lin_b"]
    return h


# ----------------------------------------------------------------------------
if __name__ == "__main__":
    key = jax.random.PRNGKey(0)
    N = 16
    node_dim, edge_dim, hidden_dim = 32, 16, 32
    num_blocks, k, cutoff = 2, 6, 10.0

    ks = jax.random.split(key, 4)
    h = jax.random.normal(ks[0], (N, node_dim), F32)
    pos = 3.0 * jax.random.normal(ks[1], (N, 3), F32)
    batch = jnp.repeat(jnp.arange(2), N // 2)                 # two graphs of 8 nodes (> k)
    cls = jax.random.randint(ks[2], (N,), 0, 3)               # {none, mol, frag} exclusive
    is_mol = (cls == 1).astype(jnp.int32)
    is_frag = (cls == 2).astype(jnp.int32)

    params = init_params(ks[3], node_dim, edge_dim, hidden_dim, num_blocks, cutoff)
    kparams = prepare_kernel_params(params)

    out = node_bond_net_forward(h, pos, batch, is_mol, is_frag, params, kparams, k=k)
    out = jax.block_until_ready(out)

    edge_index, edge_feat = build_edge_inputs(pos, batch, is_mol, is_frag, params, k)
    ref = ref_forward(h, edge_feat, edge_index, params)
    if not jnp.allclose(out, ref, atol=5e-3, rtol=5e-3):
        raise AssertionError("Pallas NodeBondNet mismatch vs JAX reference")

    print("KERNEL_OK")
</pallas_src>

<mosaic_0001>
module attributes {stable_mosaic.version = 11 : i64} {
  func.func @_fused_block_kernel(%arg0: i32, %arg1: memref<96xi32, #tpu.memory_space<smem>>, %arg2: memref<96x26xf32, #tpu.memory_space<vmem>>, %arg3: memref<16x32xf32, #tpu.memory_space<vmem>>, %arg4: memref<26x16xbf16, #tpu.memory_space<vmem>>, %arg5: memref<1x16xf32, #tpu.memory_space<vmem>>, %arg6: memref<1x32x96xbf16, #tpu.memory_space<vmem>>, %arg7: memref<1x1x32xf32, #tpu.memory_space<vmem>>, %arg8: memref<1x32x32xbf16, #tpu.memory_space<vmem>>, %arg9: memref<1x1x32xf32, #tpu.memory_space<vmem>>, %arg10: memref<1x1x32xf32, #tpu.memory_space<vmem>>, %arg11: memref<1x16x64xbf16, #tpu.memory_space<vmem>>, %arg12: memref<1x1x32xf32, #tpu.memory_space<vmem>>, %arg13: memref<1x32x32xbf16, #tpu.memory_space<vmem>>, %arg14: memref<1x1x32xf32, #tpu.memory_space<vmem>>, %arg15: memref<1x32x32xbf16, #tpu.memory_space<vmem>>, %arg16: memref<1x1x32xf32, #tpu.memory_space<vmem>>, %arg17: memref<1x1x32xf32, #tpu.memory_space<vmem>>, %arg18: memref<1x32x32xbf16, #tpu.memory_space<vmem>>, %arg19: memref<1x1x32xf32, #tpu.memory_space<vmem>>, %arg20: memref<1x1x32xf32, #tpu.memory_space<vmem>>, %arg21: memref<1x1x32xf32, #tpu.memory_space<vmem>>, %arg22: memref<1x32x32xbf16, #tpu.memory_space<vmem>>, %arg23: memref<1x1x32xf32, #tpu.memory_space<vmem>>, %arg24: memref<32x32xbf16, #tpu.memory_space<vmem>>, %arg25: memref<1x32xf32, #tpu.memory_space<vmem>>, %arg26: memref<16x32xf32, #tpu.memory_space<vmem>>, %arg27: memref<96x16xf32, #tpu.memory_space<vmem>>, %arg28: memref<16x32xf32, #tpu.memory_space<vmem>>, %arg29: memref<16x64xf32, #tpu.memory_space<vmem>>, %arg30: memref<96x64xf32, #tpu.memory_space<vmem>>, %arg31: memref<96x32xf32, #tpu.memory_space<vmem>>) attributes {dimension_semantics = [#tpu.dimension_semantics<arbitrary>], iteration_bounds = array<i64: 2>, scalar_prefetch = 1 : i64, scratch_operands = 5 : i64, tpu.core_type = #tpu.core_type<tc>, window_params = [{pipeline_mode = #tpu.pipeline_mode<synchronous>, transform_indices = @transform_0, window_bounds = array<i64: 96, 26>}, {pipeline_mode = #tpu.pipeline_mode<synchronous>, transform_indices = @transform_1, window_bounds = array<i64: 16, 32>}, {pipeline_mode = #tpu.pipeline_mode<synchronous>, transform_indices = @transform_2, window_bounds = array<i64: 26, 16>}, {pipeline_mode = #tpu.pipeline_mode<synchronous>, transform_indices = @transform_3, window_bounds = array<i64: 1, 16>}, {transform_indices = @transform_4, window_bounds = array<i64: 1, 32, 96>}, {transform_indices = @transform_5, window_bounds = array<i64: 1, 1, 32>}, {transform_indices = @transform_6, window_bounds = array<i64: 1, 32, 32>}, {transform_indices = @transform_7, window_bounds = array<i64: 1, 1, 32>}, {transform_indices = @transform_8, window_bounds = array<i64: 1, 1, 32>}, {transform_indices = @transform_9, window_bounds = array<i64: 1, 16, 64>}, {transform_indices = @transform_10, window_bounds = array<i64: 1, 1, 32>}, {transform_indices = @transform_11, window_bounds = array<i64: 1, 32, 32>}, {transform_indices = @transform_12, window_bounds = array<i64: 1, 1, 32>}, {transform_indices = @transform_13, window_bounds = array<i64: 1, 32, 32>}, {transform_indices = @transform_14, window_bounds = array<i64: 1, 1, 32>}, {transform_indices = @transform_15, window_bounds = array<i64: 1, 1, 32>}, {transform_indices = @transform_16, window_bounds = array<i64: 1, 32, 32>}, {transform_indices = @transform_17, window_bounds = array<i64: 1, 1, 32>}, {transform_indices = @transform_18, window_bounds = array<i64: 1, 1, 32>}, {transform_indices = @transform_19, window_bounds = array<i64: 1, 1, 32>}, {transform_indices = @transform_20, window_bounds = array<i64: 1, 32, 32>}, {transform_indices = @transform_21, window_bounds = array<i64: 1, 1, 32>}, {pipeline_mode = #tpu.pipeline_mode<synchronous>, transform_indices = @transform_22, window_bounds = array<i64: 32, 32>}, {pipeline_mode = #tpu.pipeline_mode<synchronous>, transform_indices = @transform_23, window_bounds = array<i64: 1, 32>}, {pipeline_mode = #tpu.pipeline_mode<synchronous>, transform_indices = @transform_24, window_bounds = array<i64: 16, 32>}]} {
    %c0_i32 = arith.constant 0 : i32
    %0 = arith.cmpi eq, %arg0, %c0_i32 : i32
    %1 = arith.extui %0 : i1 to i32
    %c0_i32_0 = arith.constant 0 : i32
    %2 = arith.cmpi ne, %1, %c0_i32_0 : i32
    scf.if %2 {
      %c0_100 = arith.constant 0 : index
      %c0_101 = arith.constant 0 : index
      %146 = vector.load %arg3[%c0_100, %c0_101] : memref<16x32xf32, #tpu.memory_space<vmem>>, vector<16x32xf32>
      %c0_102 = arith.constant 0 : index
      %c0_103 = arith.constant 0 : index
      %147 = vector.load %arg28[%c0_102, %c0_103] : memref<16x32xf32, #tpu.memory_space<vmem>>, vector<16x32xf32>
      tpu.vector_store %arg28[%c0_102, %c0_103], %146 {strides = array<i32>} : memref<16x32xf32, #tpu.memory_space<vmem>>, vector<16x32xf32>,
      %c0_104 = arith.constant 0 : index
      %c0_105 = arith.constant 0 : index
      %148 = vector.load %arg2[%c0_104, %c0_105] : memref<96x26xf32, #tpu.memory_space<vmem>>, vector<96x26xf32>
      %149 = arith.truncf %148 : vector<96x26xf32> to vector<96x26xbf16>
      %c0_106 = arith.constant 0 : index
      %c0_107 = arith.constant 0 : index
      %150 = vector.load %arg4[%c0_106, %c0_107] : memref<26x16xbf16, #tpu.memory_space<vmem>>, vector<26x16xbf16>
      %cst_108 = arith.constant dense<0.000000e+00> : vector<96x16xf32>
      %151 = tpu.matmul %149, %150, %cst_108 {dimension_numbers = #tpu.dot_dimension_numbers<[1], [0], [0], [1], [0, 0, 1, 1], [], []>} : vector<96x26xbf16>, vector<26x16xbf16>, vector<96x16xf32> -> vector<96x16xf32>
      %c0_109 = arith.constant 0 : index
      %c0_110 = arith.constant 0 : index
      %152 = vector.load %arg5[%c0_109, %c0_110] : memref<1x16xf32, #tpu.memory_space<vmem>>, vector<1x16xf32>
      %153 = vector.broadcast %152 : vector<1x16xf32> to vector<96x16xf32>
      %154 = arith.addf %151, %153 : vector<96x16xf32>
      %c0_111 = arith.constant 0 : index
      %c0_112 = arith.constant 0 : index
      %155 = vector.load %arg27[%c0_111, %c0_112] : memref<96x16xf32, #tpu.memory_space<vmem>>, vector<96x16xf32>
      tpu.vector_store %arg27[%c0_111, %c0_112], %154 {strides = array<i32>} : memref<96x16xf32, #tpu.memory_space<vmem>>, vector<96x16xf32>,
    } else {
    }
    %c0 = arith.constant 0 : index
    %c0_1 = arith.constant 0 : index
    %3 = vector.load %arg28[%c0, %c0_1] : memref<16x32xf32, #tpu.memory_space<vmem>>, vector<16x32xf32>
    %c0_2 = arith.constant 0 : index
    %c0_3 = arith.constant 0 : index
    %4 = vector.load %arg27[%c0_2, %c0_3] : memref<96x16xf32, #tpu.memory_space<vmem>>, vector<96x16xf32>
    %5 = arith.truncf %3 : vector<16x32xf32> to vector<16x32xbf16>
    %6 = arith.truncf %4 : vector<96x16xf32> to vector<96x16xbf16>
    %c0_4 = arith.constant 0 : index
    %c0_5 = arith.constant 0 : index
    %c0_6 = arith.constant 0 : index
    %7 = vector.load %arg6[%c0_4, %c0_5, %c0_6] : memref<1x32x96xbf16, #tpu.memory_space<vmem>>, vector<1x32x96xbf16>
    %8 = vector.shape_cast %7 : vector<1x32x96xbf16> to vector<32x96xbf16>
    %cst = arith.constant dense<0.000000e+00> : vector<16x96xf32>
    %9 = tpu.matmul %5, %8, %cst {dimension_numbers = #tpu.dot_dimension_numbers<[1], [0], [0], [1], [0, 0, 1, 1], [], []>} : vector<16x32xbf16>, vector<32x96xbf16>, vector<16x96xf32> -> vector<16x96xf32>
    %10 = vector.extract_strided_slice %9 {offsets = [0, 0], sizes = [16, 32], strides = [1, 1]} : vector<16x96xf32> to vector<16x32xf32>
    %c0_7 = arith.constant 0 : index
    %c0_8 = arith.constant 0 : index
    %c0_9 = arith.constant 0 : index
    %11 = vector.load %arg7[%c0_7, %c0_8, %c0_9] : memref<1x1x32xf32, #tpu.memory_space<vmem>>, vector<1x1x32xf32>
    %12 = vector.shape_cast %11 : vector<1x1x32xf32> to vector<1x32xf32>
    %13 = vector.broadcast %12 : vector<1x32xf32> to vector<16x32xf32>
    %14 = arith.addf %10, %13 : vector<16x32xf32>
    %cst_10 = arith.constant 0.000000e+00 : f32
    %15 = vector.broadcast %cst_10 : f32 to vector<16x32xf32>
    %16 = arith.maximumf %14, %15 : vector<16x32xf32>
    %17 = arith.truncf %16 : vector<16x32xf32> to vector<16x32xbf16>
    %c0_11 = arith.constant 0 : index
    %c0_12 = arith.constant 0 : index
    %c0_13 = arith.constant 0 : index
    %18 = vector.load %arg8[%c0_11, %c0_12, %c0_13] : memref<1x32x32xbf16, #tpu.memory_space<vmem>>, vector<1x32x32xbf16>
    %19 = vector.shape_cast %18 : vector<1x32x32xbf16> to vector<32x32xbf16>
    %cst_14 = arith.constant dense<0.000000e+00> : vector<16x32xf32>
    %20 = tpu.matmul %17, %19, %cst_14 {dimension_numbers = #tpu.dot_dimension_numbers<[1], [0], [0], [1], [0, 0, 1, 1], [], []>} : vector<16x32xbf16>, vector<32x32xbf16>, vector<16x32xf32> -> vector<16x32xf32>
    %c0_15 = arith.constant 0 : index
    %c0_16 = arith.constant 0 : index
    %c0_17 = arith.constant 0 : index
    %21 = vector.load %arg9[%c0_15, %c0_16, %c0_17] : memref<1x1x32xf32, #tpu.memory_space<vmem>>, vector<1x1x32xf32>
    %22 = vector.shape_cast %21 : vector<1x1x32xf32> to vector<1x32xf32>
    %23 = vector.broadcast %22 : vector<1x32xf32> to vector<16x32xf32>
    %24 = arith.addf %20, %23 : vector<16x32xf32>
    %25 = vector.extract_strided_slice %9 {offsets = [0, 32], sizes = [16, 32], strides = [1, 1]} : vector<16x96xf32> to vector<16x32xf32>
    %c0_18 = arith.constant 0 : index
    %c0_19 = arith.constant 0 : index
    %c0_20 = arith.constant 0 : index
    %26 = vector.load %arg10[%c0_18, %c0_19, %c0_20] : memref<1x1x32xf32, #tpu.memory_space<vmem>>, vector<1x1x32xf32>
    %27 = vector.shape_cast %26 : vector<1x1x32xf32> to vector<1x32xf32>
    %28 = vector.broadcast %27 : vector<1x32xf32> to vector<16x32xf32>
    %29 = arith.addf %25, %28 : vector<16x32xf32>
    %30 = vector.extract_strided_slice %9 {offsets = [0, 64], sizes = [16, 32], strides = [1, 1]} : vector<16x96xf32> to vector<16x32xf32>
    %c0_21 = arith.constant 0 : index
    %c0_22 = arith.constant 0 : index
    %31 = vector.load %arg29[%c0_21, %c0_22] : memref<16x64xf32, #tpu.memory_space<vmem>>, vector<16x32xf32>
    tpu.vector_store %arg29[%c0_21, %c0_22], %24 {strides = array<i32>} : memref<16x64xf32, #tpu.memory_space<vmem>>, vector<16x32xf32>,
    %c0_23 = arith.constant 0 : index
    %c32 = arith.constant 32 : index
    %32 = vector.load %arg29[%c0_23, %c32] : memref<16x64xf32, #tpu.memory_space<vmem>>, vector<16x32xf32>
    tpu.vector_store %arg29[%c0_23, %c32], %30 {strides = array<i32>} : memref<16x64xf32, #tpu.memory_space<vmem>>, vector<16x32xf32>,
    %c0_24 = arith.constant 0 : index
    %c0_25 = arith.constant 0 : index
    %c0_26 = arith.constant 0 : index
    %33 = vector.load %arg11[%c0_24, %c0_25, %c0_26] : memref<1x16x64xbf16, #tpu.memory_space<vmem>>, vector<1x16x64xbf16>
    %34 = vector.shape_cast %33 : vector<1x16x64xbf16> to vector<16x64xbf16>
    %cst_27 = arith.constant dense<0.000000e+00> : vector<96x64xf32>
    %35 = tpu.matmul %6, %34, %cst_27 {dimension_numbers = #tpu.dot_dimension_numbers<[1], [0], [0], [1], [0, 0, 1, 1], [], []>} : vector<96x16xbf16>, vector<16x64xbf16>, vector<96x64xf32> -> vector<96x64xf32>
    %36 = vector.extract_strided_slice %35 {offsets = [0, 0], sizes = [96, 32], strides = [1, 1]} : vector<96x64xf32> to vector<96x32xf32>
    %c0_28 = arith.constant 0 : index
    %c0_29 = arith.constant 0 : index
    %c0_30 = arith.constant 0 : index
    %37 = vector.load %arg12[%c0_28, %c0_29, %c0_30] : memref<1x1x32xf32, #tpu.memory_space<vmem>>, vector<1x1x32xf32>
    %38 = vector.shape_cast %37 : vector<1x1x32xf32> to vector<1x32xf32>
    %39 = vector.broadcast %38 : vector<1x32xf32> to vector<96x32xf32>
    %40 = arith.addf %36, %39 : vector<96x32xf32>
    %cst_31 = arith.constant 0.000000e+00 : f32
    %41 = vector.broadcast %cst_31 : f32 to vector<96x32xf32>
    %42 = arith.maximumf %40, %41 : vector<96x32xf32>
    %43 = arith.truncf %42 : vector<96x32xf32> to vector<96x32xbf16>
    %c0_32 = arith.constant 0 : index
    %c0_33 = arith.constant 0 : index
    %c0_34 = arith.constant 0 : index
    %44 = vector.load %arg13[%c0_32, %c0_33, %c0_34] : memref<1x32x32xbf16, #tpu.memory_space<vmem>>, vector<1x32x32xbf16>
    %45 = vector.shape_cast %44 : vector<1x32x32xbf16> to vector<32x32xbf16>
    %cst_35 = arith.constant dense<0.000000e+00> : vector<96x32xf32>
    %46 = tpu.matmul %43, %45, %cst_35 {dimension_numbers = #tpu.dot_dimension_numbers<[1], [0], [0], [1], [0, 0, 1, 1], [], []>} : vector<96x32xbf16>, vector<32x32xbf16>, vector<96x32xf32> -> vector<96x32xf32>
    %c0_36 = arith.constant 0 : index
    %c0_37 = arith.constant 0 : index
    %c0_38 = arith.constant 0 : index
    %47 = vector.load %arg14[%c0_36, %c0_37, %c0_38] : memref<1x1x32xf32, #tpu.memory_space<vmem>>, vector<1x1x32xf32>
    %48 = vector.shape_cast %47 : vector<1x1x32xf32> to vector<1x32xf32>
    %49 = vector.broadcast %48 : vector<1x32xf32> to vector<96x32xf32>
    %50 = arith.addf %46, %49 : vector<96x32xf32>
    %51 = vector.extract_strided_slice %35 {offsets = [0, 32], sizes = [96, 32], strides = [1, 1]} : vector<96x64xf32> to vector<96x32xf32>
    %c0_i32_39 = arith.constant 0 : i32
    %c96_i32 = arith.constant 96 : i32
    %52 = arith.addi %c0_i32_39, %c96_i32 : i32
    %c1_i32 = arith.constant 1 : i32
    scf.for %arg32 = %c0_i32_39 to %52 step %c1_i32  : i32 {
      %146 = arith.index_cast %arg32 : i32 to index
      %147 = memref.load %arg1[%146] : memref<96xi32, #tpu.memory_space<smem>>
      %148 = arith.index_cast %147 : i32 to index
      %c0_100 = arith.constant 0 : index
      %149 = vector.load %arg29[%148, %c0_100] : memref<16x64xf32, #tpu.memory_space<vmem>>, vector<1x64xf32>
      %150 = vector.shape_cast %149 : vector<1x64xf32> to vector<64xf32>
      %151 = arith.index_cast %arg32 : i32 to index
      %c0_101 = arith.constant 0 : index
      %152 = vector.load %arg30[%151, %c0_101] : memref<96x64xf32, #tpu.memory_space<vmem>>, vector<1x64xf32>
      %153 = vector.shape_cast %152 : vector<1x64xf32> to vector<64xf32>
      %154 = vector.shape_cast %150 : vector<64xf32> to vector<1x64xf32>
      tpu.vector_store %arg30[%151, %c0_101], %154 {strides = array<i32>} : memref<96x64xf32, #tpu.memory_space<vmem>>, vector<1x64xf32>,
    }
    %c96_i32_40 = arith.constant 96 : i32
    %c0_41 = arith.constant 0 : index
    %c0_42 = arith.constant 0 : index
    %53 = vector.load %arg30[%c0_41, %c0_42] : memref<96x64xf32, #tpu.memory_space<vmem>>, vector<96x64xf32>
    %54 = vector.extract_strided_slice %53 {offsets = [0, 0], sizes = [96, 32], strides = [1, 1]} : vector<96x64xf32> to vector<96x32xf32>
    %55 = vector.extract_strided_slice %53 {offsets = [0, 32], sizes = [96, 32], strides = [1, 1]} : vector<96x64xf32> to vector<96x32xf32>
    %56 = arith.mulf %50, %54 : vector<96x32xf32>
    %57 = arith.truncf %56 : vector<96x32xf32> to vector<96x32xbf16>
    %c0_43 = arith.constant 0 : index
    %c0_44 = arith.constant 0 : index
    %c0_45 = arith.constant 0 : index
    %58 = vector.load %arg15[%c0_43, %c0_44, %c0_45] : memref<1x32x32xbf16, #tpu.memory_space<vmem>>, vector<1x32x32xbf16>
    %59 = vector.shape_cast %58 : vector<1x32x32xbf16> to vector<32x32xbf16>
    %cst_46 = arith.constant dense<0.000000e+00> : vector<96x32xf32>
    %60 = tpu.matmul %57, %59, %cst_46 {dimension_numbers = #tpu.dot_dimension_numbers<[1], [0], [0], [1], [0, 0, 1, 1], [], []>} : vector<96x32xbf16>, vector<32x32xbf16>, vector<96x32xf32> -> vector<96x32xf32>
    %c0_47 = arith.constant 0 : index
    %c0_48 = arith.constant 0 : index
    %c0_49 = arith.constant 0 : index
    %61 = vector.load %arg16[%c0_47, %c0_48, %c0_49] : memref<1x1x32xf32, #tpu.memory_space<vmem>>, vector<1x1x32xf32>
    %62 = vector.shape_cast %61 : vector<1x1x32xf32> to vector<1x32xf32>
    %63 = vector.broadcast %62 : vector<1x32xf32> to vector<96x32xf32>
    %64 = arith.addf %60, %63 : vector<96x32xf32>
    %65 = arith.addf %51, %55 : vector<96x32xf32>
    %c0_50 = arith.constant 0 : index
    %c0_51 = arith.constant 0 : index
    %c0_52 = arith.constant 0 : index
    %66 = vector.load %arg17[%c0_50, %c0_51, %c0_52] : memref<1x1x32xf32, #tpu.memory_space<vmem>>, vector<1x1x32xf32>
    %67 = vector.shape_cast %66 : vector<1x1x32xf32> to vector<1x32xf32>
    %68 = vector.broadcast %67 : vector<1x32xf32> to vector<96x32xf32>
    %69 = arith.addf %65, %68 : vector<96x32xf32>
    %cst_53 = arith.constant 0.000000e+00 : f32
    %70 = vector.broadcast %cst_53 : f32 to vector<96x32xf32>
    %71 = arith.maximumf %69, %70 : vector<96x32xf32>
    %72 = arith.truncf %71 : vector<96x32xf32> to vector<96x32xbf16>
    %c0_54 = arith.constant 0 : index
    %c0_55 = arith.constant 0 : index
    %c0_56 = arith.constant 0 : index
    %73 = vector.load %arg18[%c0_54, %c0_55, %c0_56] : memref<1x32x32xbf16, #tpu.memory_space<vmem>>, vector<1x32x32xbf16>
    %74 = vector.shape_cast %73 : vector<1x32x32xbf16> to vector<32x32xbf16>
    %cst_57 = arith.constant dense<0.000000e+00> : vector<96x32xf32>
    %75 = tpu.matmul %72, %74, %cst_57 {dimension_numbers = #tpu.dot_dimension_numbers<[1], [0], [0], [1], [0, 0, 1, 1], [], []>} : vector<96x32xbf16>, vector<32x32xbf16>, vector<96x32xf32> -> vector<96x32xf32>
    %c0_58 = arith.constant 0 : index
    %c0_59 = arith.constant 0 : index
    %c0_60 = arith.constant 0 : index
    %76 = vector.load %arg19[%c0_58, %c0_59, %c0_60] : memref<1x1x32xf32, #tpu.memory_space<vmem>>, vector<1x1x32xf32>
    %77 = vector.shape_cast %76 : vector<1x1x32xf32> to vector<1x32xf32>
    %78 = vector.broadcast %77 : vector<1x32xf32> to vector<96x32xf32>
    %79 = arith.addf %75, %78 : vector<96x32xf32>
    %80 = arith.negf %79 : vector<96x32xf32>
    %81 = math.exp %80 : vector<96x32xf32>
    %cst_61 = arith.constant 1.000000e+00 : f32
    %82 = vector.broadcast %cst_61 : f32 to vector<96x32xf32>
    %83 = arith.addf %82, %81 : vector<96x32xf32>
    %84 = arith.divf %82, %83 : vector<96x32xf32>
    %85 = arith.mulf %64, %84 : vector<96x32xf32>
    %c0_62 = arith.constant 0 : index
    %c0_63 = arith.constant 0 : index
    %86 = vector.load %arg31[%c0_62, %c0_63] : memref<96x32xf32, #tpu.memory_space<vmem>>, vector<96x32xf32>
    tpu.vector_store %arg31[%c0_62, %c0_63], %85 {strides = array<i32>} : memref<96x32xf32, #tpu.memory_space<vmem>>, vector<96x32xf32>,
    %c0_64 = arith.constant 0 : index
    %c0_65 = arith.constant 0 : index
    %87 = vector.load %arg31[%c0_64, %c0_65] : memref<96x32xf32, #tpu.memory_space<vmem>>, vector<16x32xf32>
    %c16 = arith.constant 16 : index
    %c0_66 = arith.constant 0 : index
    %88 = vector.load %arg31[%c16, %c0_66] : memref<96x32xf32, #tpu.memory_space<vmem>>, vector<16x32xf32>
    %89 = arith.addf %87, %88 : vector<16x32xf32>
    %c32_67 = arith.constant 32 : index
    %c0_68 = arith.constant 0 : index
    %90 = vector.load %arg31[%c32_67, %c0_68] : memref<96x32xf32, #tpu.memory_space<vmem>>, vector<16x32xf32>
    %91 = arith.addf %89, %90 : vector<16x32xf32>
    %c48 = arith.constant 48 : index
    %c0_69 = arith.constant 0 : index
    %92 = vector.load %arg31[%c48, %c0_69] : memref<96x32xf32, #tpu.memory_space<vmem>>, vector<16x32xf32>
    %93 = arith.addf %91, %92 : vector<16x32xf32>
    %c64 = arith.constant 64 : index
    %c0_70 = arith.constant 0 : index
    %94 = vector.load %arg31[%c64, %c0_70] : memref<96x32xf32, #tpu.memory_space<vmem>>, vector<16x32xf32>
    %95 = arith.addf %93, %94 : vector<16x32xf32>
    %c80 = arith.constant 80 : index
    %c0_71 = arith.constant 0 : index
    %96 = vector.load %arg31[%c80, %c0_71] : memref<96x32xf32, #tpu.memory_space<vmem>>, vector<16x32xf32>
    %97 = arith.addf %95, %96 : vector<16x32xf32>
    %98 = arith.addf %29, %97 : vector<16x32xf32>
    %cst_72 = arith.constant dense<0.000000e+00> : vector<16xf32>
    %99 = vector.multi_reduction <add>, %98, %cst_72 [1] : vector<16x32xf32> to vector<16xf32>
    %100 = vector.shape_cast %99 : vector<16xf32> to vector<16x1xf32>
    %cst_73 = arith.constant 3.200000e+01 : f32
    %101 = vector.broadcast %cst_73 : f32 to vector<16x1xf32>
    %102 = arith.divf %100, %101 : vector<16x1xf32>
    %103 = vector.broadcast %102 : vector<16x1xf32> to vector<16x32xf32>
    %104 = arith.subf %98, %103 : vector<16x32xf32>
    %105 = arith.mulf %104, %104 : vector<16x32xf32>
    %cst_74 = arith.constant dense<0.000000e+00> : vector<16xf32>
    %106 = vector.multi_reduction <add>, %105, %cst_74 [1] : vector<16x32xf32> to vector<16xf32>
    %107 = vector.shape_cast %106 : vector<16xf32> to vector<16x1xf32>
    %cst_75 = arith.constant 3.200000e+01 : f32
    %108 = vector.broadcast %cst_75 : f32 to vector<16x1xf32>
    %109 = arith.divf %107, %108 : vector<16x1xf32>
    %110 = vector.broadcast %102 : vector<16x1xf32> to vector<16x32xf32>
    %111 = arith.subf %98, %110 : vector<16x32xf32>
    %cst_76 = arith.constant 9.99999974E-6 : f32
    %112 = vector.broadcast %cst_76 : f32 to vector<16x1xf32>
    %113 = arith.addf %109, %112 : vector<16x1xf32>
    %114 = math.rsqrt %113 : vector<16x1xf32>
    %115 = vector.broadcast %114 : vector<16x1xf32> to vector<16x32xf32>
    %116 = arith.mulf %111, %115 : vector<16x32xf32>
    %c0_77 = arith.constant 0 : index
    %c0_78 = arith.constant 0 : index
    %c0_79 = arith.constant 0 : index
    %117 = vector.load %arg20[%c0_77, %c0_78, %c0_79] : memref<1x1x32xf32, #tpu.memory_space<vmem>>, vector<1x1x32xf32>
    %118 = vector.shape_cast %117 : vector<1x1x32xf32> to vector<1x32xf32>
    %119 = vector.broadcast %118 : vector<1x32xf32> to vector<16x32xf32>
    %120 = arith.mulf %116, %119 : vector<16x32xf32>
    %c0_80 = arith.constant 0 : index
    %c0_81 = arith.constant 0 : index
    %c0_82 = arith.constant 0 : index
    %121 = vector.load %arg21[%c0_80, %c0_81, %c0_82] : memref<1x1x32xf32, #tpu.memory_space<vmem>>, vector<1x1x32xf32>
    %122 = vector.shape_cast %121 : vector<1x1x32xf32> to vector<1x32xf32>
    %123 = vector.broadcast %122 : vector<1x32xf32> to vector<16x32xf32>
    %124 = arith.addf %120, %123 : vector<16x32xf32>
    %cst_83 = arith.constant 0.000000e+00 : f32
    %125 = vector.broadcast %cst_83 : f32 to vector<16x32xf32>
    %126 = arith.maximumf %124, %125 : vector<16x32xf32>
    %127 = arith.truncf %126 : vector<16x32xf32> to vector<16x32xbf16>
    %c0_84 = arith.constant 0 : index
    %c0_85 = arith.constant 0 : index
    %c0_86 = arith.constant 0 : index
    %128 = vector.load %arg22[%c0_84, %c0_85, %c0_86] : memref<1x32x32xbf16, #tpu.memory_space<vmem>>, vector<1x32x32xbf16>
    %129 = vector.shape_cast %128 : vector<1x32x32xbf16> to vector<32x32xbf16>
    %cst_87 = arith.constant dense<0.000000e+00> : vector<16x32xf32>
    %130 = tpu.matmul %127, %129, %cst_87 {dimension_numbers = #tpu.dot_dimension_numbers<[1], [0], [0], [1], [0, 0, 1, 1], [], []>} : vector<16x32xbf16>, vector<32x32xbf16>, vector<16x32xf32> -> vector<16x32xf32>
    %c0_88 = arith.constant 0 : index
    %c0_89 = arith.constant 0 : index
    %c0_90 = arith.constant 0 : index
    %131 = vector.load %arg23[%c0_88, %c0_89, %c0_90] : memref<1x1x32xf32, #tpu.memory_space<vmem>>, vector<1x1x32xf32>
    %132 = vector.shape_cast %131 : vector<1x1x32xf32> to vector<1x32xf32>
    %133 = vector.broadcast %132 : vector<1x32xf32> to vector<16x32xf32>
    %134 = arith.addf %130, %133 : vector<16x32xf32>
    %135 = arith.truncf %134 : vector<16x32xf32> to vector<16x32xbf16>
    %c0_91 = arith.constant 0 : index
    %c0_92 = arith.constant 0 : index
    %136 = vector.load %arg24[%c0_91, %c0_92] : memref<32x32xbf16, #tpu.memory_space<vmem>>, vector<32x32xbf16>
    %cst_93 = arith.constant dense<0.000000e+00> : vector<16x32xf32>
    %137 = tpu.matmul %135, %136, %cst_93 {dimension_numbers = #tpu.dot_dimension_numbers<[1], [0], [0], [1], [0, 0, 1, 1], [], []>} : vector<16x32xbf16>, vector<32x32xbf16>, vector<16x32xf32> -> vector<16x32xf32>
    %c0_94 = arith.constant 0 : index
    %c0_95 = arith.constant 0 : index
    %138 = vector.load %arg25[%c0_94, %c0_95] : memref<1x32xf32, #tpu.memory_space<vmem>>, vector<1x32xf32>
    %139 = vector.broadcast %138 : vector<1x32xf32> to vector<16x32xf32>
    %140 = arith.addf %137, %139 : vector<16x32xf32>
    %141 = arith.addf %3, %140 : vector<16x32xf32>
    %c0_96 = arith.constant 0 : index
    %c0_97 = arith.constant 0 : index
    %142 = vector.load %arg28[%c0_96, %c0_97] : memref<16x32xf32, #tpu.memory_space<vmem>>, vector<16x32xf32>
    tpu.vector_store %arg28[%c0_96, %c0_97], %141 {strides = array<i32>} : memref<16x32xf32, #tpu.memory_space<vmem>>, vector<16x32xf32>,
    %c1_i32_98 = arith.constant 1 : i32
    %143 = arith.cmpi eq, %arg0, %c1_i32_98 : i32
    %144 = arith.extui %143 : i1 to i32
    %c0_i32_99 = arith.constant 0 : i32
    %145 = arith.cmpi ne, %144, %c0_i32_99 : i32
    scf.if %145 {
      %c0_100 = arith.constant 0 : index
      %c0_101 = arith.constant 0 : index
      %146 = vector.load %arg26[%c0_100, %c0_101] : memref<16x32xf32, #tpu.memory_space<vmem>>, vector<16x32xf32>
      tpu.vector_store %arg26[%c0_100, %c0_101], %141 {strides = array<i32>} : memref<16x32xf32, #tpu.memory_space<vmem>>, vector<16x32xf32>,
    } else {
    }
    return
  }
  func.func @transform_0(%arg0: i32, %arg1: memref<96xi32, #tpu.memory_space<smem>>) -> (i32, i32) {
    %c0_i32 = arith.constant 0 : i32
    %c0_i32_0 = arith.constant 0 : i32
    %c0_i32_1 = arith.constant 0 : i32
    return %c0_i32, %c0_i32_0 : i32, i32
  }
  func.func @transform_1(%arg0: i32, %arg1: memref<96xi32, #tpu.memory_space<smem>>) -> (i32, i32) {
    %c0_i32 = arith.constant 0 : i32
    %c0_i32_0 = arith.constant 0 : i32
    %c0_i32_1 = arith.constant 0 : i32
    return %c0_i32, %c0_i32_0 : i32, i32
  }
  func.func @transform_2(%arg0: i32, %arg1: memref<96xi32, #tpu.memory_space<smem>>) -> (i32, i32) {
    %c0_i32 = arith.constant 0 : i32
    %c0_i32_0 = arith.constant 0 : i32
    %c0_i32_1 = arith.constant 0 : i32
    return %c0_i32, %c0_i32_0 : i32, i32
  }
  func.func @transform_3(%arg0: i32, %arg1: memref<96xi32, #tpu.memory_space<smem>>) -> (i32, i32) {
    %c0_i32 = arith.constant 0 : i32
    %c0_i32_0 = arith.constant 0 : i32
    %c0_i32_1 = arith.constant 0 : i32
    return %c0_i32, %c0_i32_0 : i32, i32
  }
  func.func @transform_4(%arg0: i32, %arg1: memref<96xi32, #tpu.memory_space<smem>>) -> (i32, i32, i32) {
    %c0_i32 = arith.constant 0 : i32
    %c0_i32_0 = arith.constant 0 : i32
    %c0_i32_1 = arith.constant 0 : i32
    return %arg0, %c0_i32, %c0_i32_0 : i32, i32, i32
  }
  func.func @transform_5(%arg0: i32, %arg1: memref<96xi32, #tpu.memory_space<smem>>) -> (i32, i32, i32) {
    %c0_i32 = arith.constant 0 : i32
    %c0_i32_0 = arith.constant 0 : i32
    %c0_i32_1 = arith.constant 0 : i32
    return %arg0, %c0_i32, %c0_i32_0 : i32, i32, i32
  }
  func.func @transform_6(%arg0: i32, %arg1: memref<96xi32, #tpu.memory_space<smem>>) -> (i32, i32, i32) {
    %c0_i32 = arith.constant 0 : i32
    %c0_i32_0 = arith.constant 0 : i32
    %c0_i32_1 = arith.constant 0 : i32
    return %arg0, %c0_i32, %c0_i32_0 : i32, i32, i32
  }
  func.func @transform_7(%arg0: i32, %arg1: memref<96xi32, #tpu.memory_space<smem>>) -> (i32, i32, i32) {
    %c0_i32 = arith.constant 0 : i32
    %c0_i32_0 = arith.constant 0 : i32
    %c0_i32_1 = arith.constant 0 : i32
    return %arg0, %c0_i32, %c0_i32_0 : i32, i32, i32
  }
  func.func @transform_8(%arg0: i32, %arg1: memref<96xi32, #tpu.memory_space<smem>>) -> (i32, i32, i32) {
    %c0_i32 = arith.constant 0 : i32
    %c0_i32_0 = arith.constant 0 : i32
    %c0_i32_1 = arith.constant 0 : i32
    return %arg0, %c0_i32, %c0_i32_0 : i32, i32, i32
  }
  func.func @transform_9(%arg0: i32, %arg1: memref<96xi32, #tpu.memory_space<smem>>) -> (i32, i32, i32) {
    %c0_i32 = arith.constant 0 : i32
    %c0_i32_0 = arith.constant 0 : i32
    %c0_i32_1 = arith.constant 0 : i32
    return %arg0, %c0_i32, %c0_i32_0 : i32, i32, i32
  }
  func.func @transform_10(%arg0: i32, %arg1: memref<96xi32, #tpu.memory_space<smem>>) -> (i32, i32, i32) {
    %c0_i32 = arith.constant 0 : i32
    %c0_i32_0 = arith.constant 0 : i32
    %c0_i32_1 = arith.constant 0 : i32
    return %arg0, %c0_i32, %c0_i32_0 : i32, i32, i32
  }
  func.func @transform_11(%arg0: i32, %arg1: memref<96xi32, #tpu.memory_space<smem>>) -> (i32, i32, i32) {
    %c0_i32 = arith.constant 0 : i32
    %c0_i32_0 = arith.constant 0 : i32
    %c0_i32_1 = arith.constant 0 : i32
    return %arg0, %c0_i32, %c0_i32_0 : i32, i32, i32
  }
  func.func @transform_12(%arg0: i32, %arg1: memref<96xi32, #tpu.memory_space<smem>>) -> (i32, i32, i32) {
    %c0_i32 = arith.constant 0 : i32
    %c0_i32_0 = arith.constant 0 : i32
    %c0_i32_1 = arith.constant 0 : i32
    return %arg0, %c0_i32, %c0_i32_0 : i32, i32, i32
  }
  func.func @transform_13(%arg0: i32, %arg1: memref<96xi32, #tpu.memory_space<smem>>) -> (i32, i32, i32) {
    %c0_i32 = arith.constant 0 : i32
    %c0_i32_0 = arith.constant 0 : i32
    %c0_i32_1 = arith.constant 0 : i32
    return %arg0, %c0_i32, %c0_i32_0 : i32, i32, i32
  }
  func.func @transform_14(%arg0: i32, %arg1: memref<96xi32, #tpu.memory_space<smem>>) -> (i32, i32, i32) {
    %c0_i32 = arith.constant 0 : i32
    %c0_i32_0 = arith.constant 0 : i32
    %c0_i32_1 = arith.constant 0 : i32
    return %arg0, %c0_i32, %c0_i32_0 : i32, i32, i32
  }
  func.func @transform_15(%arg0: i32, %arg1: memref<96xi32, #tpu.memory_space<smem>>) -> (i32, i32, i32) {
    %c0_i32 = arith.constant 0 : i32
    %c0_i32_0 = arith.constant 0 : i32
    %c0_i32_1 = arith.constant 0 : i32
    return %arg0, %c0_i32, %c0_i32_0 : i32, i32, i32
  }
  func.func @transform_16(%arg0: i32, %arg1: memref<96xi32, #tpu.memory_space<smem>>) -> (i32, i32, i32) {
    %c0_i32 = arith.constant 0 : i32
    %c0_i32_0 = arith.constant 0 : i32
    %c0_i32_1 = arith.constant 0 : i32
    return %arg0, %c0_i32, %c0_i32_0 : i32, i32, i32
  }
  func.func @transform_17(%arg0: i32, %arg1: memref<96xi32, #tpu.memory_space<smem>>) -> (i32, i32, i32) {
    %c0_i32 = arith.constant 0 : i32
    %c0_i32_0 = arith.constant 0 : i32
    %c0_i32_1 = arith.constant 0 : i32
    return %arg0, %c0_i32, %c0_i32_0 : i32, i32, i32
  }
  func.func @transform_18(%arg0: i32, %arg1: memref<96xi32, #tpu.memory_space<smem>>) -> (i32, i32, i32) {
    %c0_i32 = arith.constant 0 : i32
    %c0_i32_0 = arith.constant 0 : i32
    %c0_i32_1 = arith.constant 0 : i32
    return %arg0, %c0_i32, %c0_i32_0 : i32, i32, i32
  }
  func.func @transform_19(%arg0: i32, %arg1: memref<96xi32, #tpu.memory_space<smem>>) -> (i32, i32, i32) {
    %c0_i32 = arith.constant 0 : i32
    %c0_i32_0 = arith.constant 0 : i32
    %c0_i32_1 = arith.constant 0 : i32
    return %arg0, %c0_i32, %c0_i32_0 : i32, i32, i32
  }
  func.func @transform_20(%arg0: i32, %arg1: memref<96xi32, #tpu.memory_space<smem>>) -> (i32, i32, i32) {
    %c0_i32 = arith.constant 0 : i32
    %c0_i32_0 = arith.constant 0 : i32
    %c0_i32_1 = arith.constant 0 : i32
    return %arg0, %c0_i32, %c0_i32_0 : i32, i32, i32
  }
  func.func @transform_21(%arg0: i32, %arg1: memref<96xi32, #tpu.memory_space<smem>>) -> (i32, i32, i32) {
    %c0_i32 = arith.constant 0 : i32
    %c0_i32_0 = arith.constant 0 : i32
    %c0_i32_1 = arith.constant 0 : i32
    return %arg0, %c0_i32, %c0_i32_0 : i32, i32, i32
  }
  func.func @transform_22(%arg0: i32, %arg1: memref<96xi32, #tpu.memory_space<smem>>) -> (i32, i32) {
    %c0_i32 = arith.constant 0 : i32
    %c0_i32_0 = arith.constant 0 : i32
    %c0_i32_1 = arith.constant 0 : i32
    return %c0_i32, %c0_i32_0 : i32, i32
  }
  func.func @transform_23(%arg0: i32, %arg1: memref<96xi32, #tpu.memory_space<smem>>) -> (i32, i32) {
    %c0_i32 = arith.constant 0 : i32
    %c0_i32_0 = arith.constant 0 : i32
    %c0_i32_1 = arith.constant 0 : i32
    return %c0_i32, %c0_i32_0 : i32, i32
  }
  func.func @transform_24(%arg0: i32, %arg1: memref<96xi32, #tpu.memory_space<smem>>) -> (i32, i32) {
    %c0_i32 = arith.constant 0 : i32
    %c0_i32_0 = arith.constant 0 : i32
    %c0_i32_1 = arith.constant 0 : i32
    return %c0_i32, %c0_i32_0 : i32, i32
  }
}

</mosaic_0001>

<bundles_post_ra>
// kernel: tpu_custom_call.1
= control target key start
LH: loop header
LB: loop body
LE: loop exit
PB: predicated region body
PF: predicated region fallthrough
CT: control target
= control target key end

     0   :  { %s3582_s29 = smov [#allocation8]   ;;  %s4468_s0 = inlined_call_operand.hbm [shape: s32[96], index: 0, kind: input, shape index: {}]   ;;  %s4469_s1 = inlined_call_operand.vmem [shape: f32[96,26], index: 1, kind: input, shape index: {}]   ;;  %s4470_s2 = inlined_call_operand.hbm [shape: f32[16,32], index: 2, kind: input, shape index: {}]   ;;  %s4471_s3 = inlined_call_operand.vmem [shape: bf16[26,16], index: 3, kind: input, shape index: {}]   ;;  %s4472_s4 = inlined_call_operand.hbm [shape: f32[1,16], index: 4, kind: input, shape index: {}]   ;;  %s4473_s5 = inlined_call_operand.vmem [shape: bf16[2,32,96], index: 5, kind: input, shape index: {}]   ;;  %s4474_s6 = inlined_call_operand.hbm [shape: f32[2,1,32], index: 6, kind: input, shape index: {}]   ;;  %s4475_s7 = inlined_call_operand.vmem [shape: bf16[2,32,32], index: 7, kind: input, shape index: {}]   ;;  %s4476_s8 = inlined_call_operand.hbm [shape: f32[2,1,32], index: 8, kind: input, shape index: {}]   ;;  %s4477_s9 = inlined_call_operand.hbm [shape: f32[2,1,32], index: 9, kind: input, shape index: {}]   ;;  %s4478_s10 = inlined_call_operand.hbm [shape: bf16[2,16,64], index: 10, kind: input, shape index: {}]   ;;  %s4479_s11 = inlined_call_operand.hbm [shape: f32[2,1,32], index: 11, kind: input, shape index: {}]   ;;  %s4480_s12 = inlined_call_operand.vmem [shape: bf16[2,32,32], index: 12, kind: input, shape index: {}]   ;;  %s4481_s13 = inlined_call_operand.hbm [shape: f32[2,1,32], index: 13, kind: input, shape index: {}]   ;;  %s4482_s14 = inlined_call_operand.vmem [shape: bf16[2,32,32], index: 14, kind: input, shape index: {}]   ;;  %s4483_s15 = inlined_call_operand.vmem [shape: f32[2,1,32], index: 15, kind: input, shape index: {}]   ;;  %s4484_s16 = inlined_call_operand.vmem [shape: f32[2,1,32], index: 16, kind: input, shape index: {}]   ;;  %s4485_s17 = inlined_call_operand.vmem [shape: bf16[2,32,32], index: 17, kind: input, shape index: {}]   ;;  %s4486_s18 = inlined_call_operand.vmem [shape: f32[2,1,32], index: 18, kind: input, shape index: {}]   ;;  %s4487_s19 = inlined_call_operand.vmem [shape: f32[2,1,32], index: 19, kind: input, shape index: {}]   ;;  %s4488_s20 = inlined_call_operand.vmem [shape: f32[2,1,32], index: 20, kind: input, shape index: {}]   ;;  %s4489_s21 = inlined_call_operand.hbm [shape: bf16[2,32,32], index: 21, kind: input, shape index: {}]   ;;  %s4490_s22 = inlined_call_operand.vmem [shape: f32[2,1,32], index: 22, kind: input, shape index: {}]   ;;  %s4491_s23 = inlined_call_operand.vmem [shape: bf16[32,32], index: 23, kind: input, shape index: {}]   ;;  %s4492_s24 = inlined_call_operand.vmem [shape: f32[1,32], index: 24, kind: input, shape index: {}]   ;;  %s4493_s25 = inlined_call_operand.hbm [shape: f32[16,32], index: 25, kind: output, shape index: {}]  }
   0x1   :  { %4513 = sst [smem:[#allocation31_spill]] %s4468_s0 }
   0x2   :  { %4514 = sst [smem:[#allocation32_spill]] %s4469_s1 }
   0x3   :  { %4515 = sst [smem:[#allocation33_spill]] %s4470_s2 }
   0x4   :  { %4516 = sst [smem:[#allocation34_spill]] %s4471_s3 }
   0x5   :  { %4517 = sst [smem:[#allocation35_spill]] %s4472_s4 }
   0x6   :  { %4518 = sst [smem:[#allocation36_spill]] %s4473_s5 }
   0x7   :  { %4519 = sst [smem:[#allocation37_spill]] %s4474_s6 }
   0x8   :  { %4520 = sst [smem:[#allocation38_spill]] %s4475_s7 }
   0x9   :  { %4521 = sst [smem:[#allocation39_spill]] %s4476_s8 }
   0xa   :  { %4522 = sst [smem:[#allocation40_spill]] %s4477_s9 }
   0xb   :  { %4523 = sst [smem:[#allocation41_spill]] %s4478_s10 }
   0xc   :  { %4524 = sst [smem:[#allocation42_spill]] %s4479_s11 }
   0xd   :  { %4525 = sst [smem:[#allocation43_spill]] %s4480_s12 }
   0xe   :  { %4526 = sst [smem:[#allocation44_spill]] %s4481_s13 }
   0xf   :  { %4527 = sst [smem:[#allocation45_spill]] %s4482_s14 }
  0x10   :  { %4528 = sst [smem:[#allocation46_spill]] %s4483_s15 }
  0x11   :  { %4529 = sst [smem:[#allocation47_spill]] %s4484_s16 }
  0x12   :  { %4530 = sst [smem:[#allocation48_spill]] %s4485_s17 }
  0x13   :  { %4531 = sst [smem:[#allocation49_spill]] %s4486_s18 }
  0x14   :  { %4532 = sst [smem:[#allocation50_spill]] %s4487_s19 }
  0x15   :  { %4533 = sst [smem:[#allocation51_spill]] %s4488_s20 }
  0x16   :  { %4534 = sst [smem:[#allocation52_spill]] %s4489_s21 }
  0x17   :  { %4535 = sst [smem:[#allocation53_spill]] %s4490_s22 }
  0x18   :  { %4536 = sst [smem:[#allocation54_spill]] %s4491_s23 }
  0x19   :  { %4537 = sst [smem:[#allocation55_spill]] %s4492_s24 }
  0x1a   :  { %4538 = sst [smem:[#allocation56_spill]] %s4493_s25 }
  0x1b   :  { %s4539_s19 = sld [smem:[#allocation31_spill]] }
  0x21   :  { %31 = dma.hbm_to_smem %s4539_s19, 16, %s3582_s29, [#allocation7] }
  0x22   :  { %3544 = dma.done.wait [#allocation7], 16 }
  0x23   :  { %3545 = vsyncadd [#allocation7], 4294967280 }
  0x24   :  { %33 = sfence }
  0x25   :  { %34 = vsyncpa [#allocation10], 0 }
  0x26   :  { %35 = vsyncpa [#allocation13], 0 }
  0x27   :  { %36 = vsyncpa [#allocation11], 0  ;;  %s3736_s30 = smov 0   ;;  %s3738_s7 = smov 0  }
  0x28   :  { %s3740_s3 = smov 0   ;;  %s3742_s26 = smov 0  }
  0x29 LB: > { %4540 = sst [smem:[#allocation27_spill]] %s3568_s7  ;;  %s3755_s19 = sadd.s32 4294967295, %s3576_s26   ;;  %s3576_s26 = sphi %s3742_s26, %s4593_s26   ;;  %s3572_s3 = sphi %s3740_s3, %s4596_s3   ;;  %s3568_s7 = sphi %s3738_s7, %s4595_s7   ;;  %s3564_s30 = sphi %s3736_s30, %s4594_s30  }
  0x2a   : > { %4541 = sst [smem:[#allocation28_spill]] %s3572_s3  ;;  %s3758_s1 = sadd.s32 1, %s3576_s26  }
  0x2b   : > { %4542 = sst [smem:[#allocation29_spill]] %s3758_s1  ;;  %s156_s8 = ssub.s32 %s3576_s26, %s3758_s1 }
  0x2c   : > { %s159_s27 = sadd.s32 1, %s3572_s3  ;;  %p157_p0 = scmp.eq.s32.totalorder %s156_s8, 0 }
  0x2d   : > { %p166_p1 = scmp.ne.s32.totalorder %s3572_s3, %s3568_s7  ;;  %p167_p2 = scmp.eq.s32.totalorder %s3576_s26, 0 }
  0x2e   : > { %p172_p3 = scmp.ne.s32.totalorder %s3568_s7, %s3564_s30  ;;  %p4499_p5 = scmp.eq.s32.totalorder %s3755_s19, 0 }
  0x2f   : > { %s3768_s4 = scalar_select %p157_p0, %s3572_s3, %s159_s27  }
  0x30   : > { %p3770_p4 = por %p167_p2, %p166_p1  ;;  %p2773_p6 = scmp.ge.s32.totalorder %s3576_s26, 1 }
  0x31   : > { %4543 = sst [smem:[#allocation30_spill]] %s3768_s4  ;;  %p662_p7 = scmp.lt.s32.totalorder %s3576_s26, 3 }
  0x32   : > { %p3779_p8 = por %p4499_p5, %p172_p3  ;;  %s3583_s0 = smov [#allocation9]  }
  0x33   : > { %p3784_p10 = pnand %p2773_p6, %p662_p7  ;;  %s677_s29 = sshll.u32 %s3583_s0, 4  ;;  %s678_s29 = int_to_ptr.vmem [resolvable:$true] %s677_s29 }
  0x34   : > { %s4545_s9 = scalar_select %p3779_p8, 1, 0 }
  0x35   : > { %s4546_s5 = scalar_select %p3784_p10, 1, 0 }
  0x36   : > { %p3085_p11 = pneg %p3784_p10  ;;  %p3116_p13 = scmp.lt.s32.totalorder %s3576_s26, 2 }
  0x37   : > { %s719_s6 = sand.u32 1, %s3576_s26   ;;  %s3799_s30 = sand.u32 1, %s3572_s3  }
  0x38   : > { %p3792_p12 = pnand %p3085_p11, %p4499_p5  ;;  %p3803_p0 = pnand %p3116_p13, %p3770_p4 }
  0x39   : > { %s3263_s27 = scalar_lea.vmem %s678_s29, 256  ;;  %p3271_p7 = scmp.lt.s32.totalorder %s678_s29, %s678_s29 }
  0x3a   : > { %s4547_s2 = scalar_select %p3792_p12, 1, 0 }
  0x3b   : > { %p4504_p1 = pneg %p3792_p12  ;;  %p3264_p2 = scmp.ne.s32.totalorder %s678_s29, %s3263_s27 }
  0x3c   : > { %p3272_p11 = scmp.lt.s32.totalorder %s3263_s27, %s3263_s27 }
  0x3d   : > { %p3266_p3 = pnand %p3264_p2, %p4504_p1 }
  0x3e   : > { %p3273_p9 = por %p3272_p11, %p3271_p7 }
  0x3f   : > { %p3267_p6 = pneg %p3266_p3 }
  0x41   : > { %p3274_p5 = pnand %p3273_p9, %p3267_p6 }
  0x43   : > { %3277 = shalt.err (!%p3274_p5)
}
  0x44   : > { %s3584_s0 = smov 128   ;;  %s3585_s28 = smov 8  }
  0x45   : > { %s4549_s1 = sld [smem:[#allocation33_spill]]  ;;  %s3818_s25 = sshll.u32 %s3576_s26, 4 }
  0x46   : > { %s4550_s27 = sld [smem:[#allocation37_spill]]  ;;  %s722_s20 = scalar_lea.vmem [#allocation14], %s3799_s30 }
  0x47   : > { %s729_s18 = sshll.u32 %s722_s20, 4  ;;  %s3827_s17 = scalar_lea.sflag [#allocation10], %s719_s6  ;;  %s730_s18 = int_to_ptr.vmem [resolvable:$true] %s729_s18 }
  0x48   : > { %p3833_p5 = pneg %p3803_p0 }
  0x4b   : > { %3088 = dma.hbm_to_vmem [thread:$0]  (!%p3792_p12), %s4549_s1, 256, %s678_s29, [#allocation10], %s3584_s0, %s3584_s0, %s3585_s28  }
  0x4c   : > { %s3824_s22 = scalar_lea.hbm %s4550_s27, %s3818_s25  ;;  %s3283_s1 = scalar_lea.hbm %s4550_s27, 32 }
  0x4d   : > { %s3278_s16 = scalar_lea.hbm %s3824_s22, 16  ;;  %p3284_p2 = scmp.lt.s32.totalorder %s3824_s22, %s4550_s27 }
  0x4e   : > { %p3279_p4 = scmp.ne.s32.totalorder %s3824_s22, %s3278_s16  ;;  %p3285_p3 = scmp.lt.s32.totalorder %s3283_s1, %s3278_s16 }
  0x50   : > { %p3281_p9 = pnand %p3833_p5, %p3279_p4  ;;  %p3286_p6 = por %p3285_p3, %p3284_p2 }
  0x52   : > { %p3282_p13 = pneg %p3281_p9 }
  0x54   : > { %p3287_p7 = pnand %p3286_p6, %p3282_p13 }
  0x56   : > { %3290 = shalt.err (!%p3287_p7)
}
  0x57   : > { %s3291_s29 = scalar_lea.vmem %s730_s18, 16  ;;  %s3586_s6 = smov [#allocation14]  }
  0x58   : > { %p3292_p11 = scmp.ne.s32.totalorder %s730_s18, %s3291_s29  ;;  %s3296_s0 = sshll.u32 %s3586_s6, 4  ;;  %s3297_s0 = int_to_ptr.vmem [resolvable:$false] %s3296_s0 }
  0x59   : > { %s3298_s28 = scalar_lea.vmem %s3297_s0, 32  ;;  %p3299_p4 = scmp.lt.s32.totalorder %s730_s18, %s3297_s0 }
  0x5a   : > { %p3294_p1 = pnand %p3292_p11, %p3833_p5  ;;  %p3300_p9 = scmp.lt.s32.totalorder %s3298_s28, %s3291_s29 }
  0x5c   : > { %p3295_p8 = pneg %p3294_p1  ;;  %p3301_p10 = por %p3300_p9, %p3299_p4 }
  0x5e   : > { %p3302_p12 = pnand %p3301_p10, %p3295_p8 }
  0x60   : > { %3305 = shalt.err (!%p3302_p12)
}
  0x61   : > { %3095 = dma.hbm_to_vmem [thread:$0]  (!%p3803_p0), %s3824_s22, 16, %s730_s18, %s3827_s17  }
  0x62   : > { %s4552_s24 = sld [smem:[#allocation39_spill]]  ;;  %s747_s4 = scalar_lea.vmem [#allocation15], %s3799_s30 }
  0x63   : > { %s754_s20 = sshll.u32 %s747_s4, 4  ;;  %s755_s20 = int_to_ptr.vmem [resolvable:$true] %s754_s20 }
  0x68   : > { %s752_s1 = scalar_lea.hbm %s4552_s24, %s3818_s25  ;;  %s3311_s28 = scalar_lea.hbm %s4552_s24, 32 }
  0x69   : > { %s3306_s6 = scalar_lea.hbm %s752_s1, 16  ;;  %p3312_p12 = scmp.lt.s32.totalorder %s752_s1, %s4552_s24 }
  0x6a   : > { %p3307_p1 = scmp.ne.s32.totalorder %s752_s1, %s3306_s6  ;;  %p3313_p13 = scmp.lt.s32.totalorder %s3311_s28, %s3306_s6 }
  0x6c   : > { %p3309_p8 = pnand %p3307_p1, %p3833_p5  ;;  %p3314_p2 = por %p3313_p13, %p3312_p12 }
  0x6e   : > { %p3310_p10 = pneg %p3309_p8 }
  0x70   : > { %p3315_p3 = pnand %p3314_p2, %p3310_p10 }
  0x72   : > { %3318 = shalt.err (!%p3315_p3)
}
  0x73   : > { %s3319_s18 = scalar_lea.vmem %s755_s20, 16  ;;  %s3587_s22 = smov [#allocation15]  }
  0x74   : > { %p3320_p6 = scmp.ne.s32.totalorder %s755_s20, %s3319_s18  ;;  %s3324_s16 = sshll.u32 %s3587_s22, 4  ;;  %s3325_s16 = int_to_ptr.vmem [resolvable:$false] %s3324_s16 }
  0x75   : > { %s3326_s23 = scalar_lea.vmem %s3325_s16, 32  ;;  %p3327_p4 = scmp.lt.s32.totalorder %s755_s20, %s3325_s16 }
  0x76   : > { %p3322_p7 = pnand %p3320_p6, %p3833_p5  ;;  %p3328_p9 = scmp.lt.s32.totalorder %s3326_s23, %s3319_s18 }
  0x78   : > { %p3323_p11 = pneg %p3322_p7  ;;  %p3329_p1 = por %p3328_p9, %p3327_p4 }
  0x7a   : > { %p3330_p8 = pnand %p3329_p1, %p3323_p11 }
  0x7c   : > { %3333 = shalt.err (!%p3330_p8)
}
  0x7d   : > { %3098 = dma.hbm_to_vmem [thread:$0]  (!%p3803_p0), %s752_s1, 16, %s755_s20, %s3827_s17  }
  0x7e   : > { %s4553_s4 = sld [smem:[#allocation40_spill]]  ;;  %s764_s29 = scalar_lea.vmem [#allocation16], %s3799_s30 }
  0x7f   : > { %s771_s0 = sshll.u32 %s764_s29, 4  ;;  %s2780_s28 = sshll.u32 %s3799_s30, 3  ;;  %s772_s0 = int_to_ptr.vmem [resolvable:$true] %s771_s0 }
  0x84   : > { %s3874_s6 = scalar_lea.hbm %s4553_s4, %s3818_s25  ;;  %s3339_s1 = scalar_lea.hbm %s4553_s4, 32 }
  0x85   : > { %s3334_s18 = scalar_lea.hbm %s3874_s6, 16  ;;  %p3340_p2 = scmp.lt.s32.totalorder %s3874_s6, %s4553_s4 }
  0x86   : > { %p3335_p10 = scmp.ne.s32.totalorder %s3874_s6, %s3334_s18  ;;  %p3341_p3 = scmp.lt.s32.totalorder %s3339_s1, %s3334_s18 }
  0x88   : > { %p3337_p12 = pnand %p3335_p10, %p3833_p5  ;;  %p3342_p6 = por %p3341_p3, %p3340_p2 }
  0x8a   : > { %p3338_p13 = pneg %p3337_p12 }
  0x8c   : > { %p3343_p7 = pnand %p3342_p6, %p3338_p13 }
  0x8e   : > { %3346 = shalt.err (!%p3343_p7)
}
  0x8f   : > { %s3347_s14 = scalar_lea.vmem %s772_s0, 16  ;;  %s3588_s27 = smov [#allocation16]  }
  0x90   : > { %p3348_p11 = scmp.ne.s32.totalorder %s772_s0, %s3347_s14  ;;  %s3352_s29 = sshll.u32 %s3588_s27, 4  ;;  %s3353_s29 = int_to_ptr.vmem [resolvable:$false] %s3352_s29 }
  0x91   : > { %s3354_s24 = scalar_lea.vmem %s3353_s29, 32  ;;  %p3355_p1 = scmp.lt.s32.totalorder %s772_s0, %s3353_s29 }
  0x92   : > { %p3350_p4 = pnand %p3348_p11, %p3833_p5  ;;  %p3356_p8 = scmp.lt.s32.totalorder %s3354_s24, %s3347_s14 }
  0x94   : > { %p3351_p9 = pneg %p3350_p4  ;;  %p3357_p10 = por %p3356_p8, %p3355_p1 }
  0x96   : > { %p3358_p12 = pnand %p3357_p10, %p3351_p9 }
  0x98   : > { %3361 = shalt.err (!%p3358_p12)
}
  0x99   : > { %3101 = dma.hbm_to_vmem [thread:$0]  (!%p3803_p0), %s3874_s6, 16, %s772_s0, %s3827_s17  }
  0x9a   : > { %s2885_s18 = sshll.u32 %s3576_s26, 7  ;;  %s4554_s10 = sld [smem:[#allocation41_spill]] }
  0x9b   : > { %s782_s24 = scalar_lea.vmem [#allocation17], %s2780_s28 }
  0x9c   : > { %s789_s20 = sshll.u32 %s782_s24, 4  ;;  %s3901_s20 = int_to_ptr.vmem [resolvable:$true] %s789_s20 }
  0xa0   : > { %s3899_s1 = scalar_lea.hbm %s4554_s10, %s2885_s18  ;;  %s3367_s0 = scalar_lea.hbm %s4554_s10, 256 }
  0xa1   : > { %s3362_s23 = scalar_lea.hbm %s3899_s1, 128  ;;  %p3368_p6 = scmp.lt.s32.totalorder %s3899_s1, %s4554_s10 }
  0xa2   : > { %p3363_p13 = scmp.ne.s32.totalorder %s3899_s1, %s3362_s23  ;;  %p3369_p7 = scmp.lt.s32.totalorder %s3367_s0, %s3362_s23 }
  0xa4   : > { %p3365_p2 = pnand %p3363_p13, %p3833_p5  ;;  %p3370_p11 = por %p3369_p7, %p3368_p6 }
  0xa6   : > { %p3366_p3 = pneg %p3365_p2 }
  0xa8   : > { %p3371_p4 = pnand %p3370_p11, %p3366_p3 }
  0xaa   : > { %3374 = shalt.err (!%p3371_p4)
}
  0xab   : > { %s3375_s28 = scalar_lea.vmem %s3901_s20, 128  ;;  %s3589_s18 = smov [#allocation17]  }
  0xac   : > { %p3376_p9 = scmp.ne.s32.totalorder %s3901_s20, %s3375_s28  ;;  %s3380_s22 = sshll.u32 %s3589_s18, 4  ;;  %s3381_s22 = int_to_ptr.vmem [resolvable:$false] %s3380_s22 }
  0xad   : > { %s3382_s16 = scalar_lea.vmem %s3381_s22, 256  ;;  %p3383_p10 = scmp.lt.s32.totalorder %s3901_s20, %s3381_s22 }
  0xae   : > { %p3378_p1 = pnand %p3376_p9, %p3833_p5  ;;  %p3384_p12 = scmp.lt.s32.totalorder %s3382_s16, %s3375_s28 }
  0xb0   : > { %p3379_p8 = pneg %p3378_p1  ;;  %p3385_p13 = por %p3384_p12, %p3383_p10 }
  0xb2   : > { %p3386_p2 = pnand %p3385_p13, %p3379_p8 }
  0xb4   : > { %3389 = shalt.err (!%p3386_p2)
}
  0xb5   : > { %s3590_s24 = smov 64   ;;  %s3591_s23 = smov 4  }
  0xb6   : > { %3104 = dma.hbm_to_vmem [thread:$0]  (!%p3803_p0), %s3899_s1, 128, %s3901_s20, %s3827_s17, %s3590_s24, %s3590_s24, %s3591_s23  }
  0xb7   : > { %s4555_s11 = sld [smem:[#allocation42_spill]]  ;;  %s802_s27 = scalar_lea.vmem [#allocation18], %s3799_s30 }
  0xb8   : > { %s809_s29 = sshll.u32 %s802_s27, 4  ;;  %s810_s29 = int_to_ptr.vmem [resolvable:$true] %s809_s29 }
  0xbd   : > { %s807_s0 = scalar_lea.hbm %s4555_s11, %s3818_s25  ;;  %s3395_s16 = scalar_lea.hbm %s4555_s11, 32 }
  0xbe   : > { %s3390_s28 = scalar_lea.hbm %s807_s0, 16  ;;  %p3396_p11 = scmp.lt.s32.totalorder %s807_s0, %s4555_s11 }
  0xbf   : > { %p3391_p3 = scmp.ne.s32.totalorder %s807_s0, %s3390_s28  ;;  %p3397_p4 = scmp.lt.s32.totalorder %s3395_s16, %s3390_s28 }
  0xc1   : > { %p3393_p6 = pnand %p3391_p3, %p3833_p5  ;;  %p3398_p9 = por %p3397_p4, %p3396_p11 }
  0xc3   : > { %p3394_p7 = pneg %p3393_p6 }
  0xc5   : > { %p3399_p1 = pnand %p3398_p9, %p3394_p7 }
  0xc7   : > { %3402 = shalt.err (!%p3399_p1)
}
  0xc8   : > { %s3403_s1 = scalar_lea.vmem %s810_s29, 16  ;;  %s3592_s20 = smov [#allocation18]  }
  0xc9   : > { %p3404_p8 = scmp.ne.s32.totalorder %s810_s29, %s3403_s1  ;;  %s3408_s14 = sshll.u32 %s3592_s20, 4  ;;  %s3409_s14 = int_to_ptr.vmem [resolvable:$false] %s3408_s14 }
  0xca   : > { %s3410_s6 = scalar_lea.vmem %s3409_s14, 32  ;;  %p3411_p13 = scmp.lt.s32.totalorder %s810_s29, %s3409_s14 }
  0xcb   : > { %p3406_p10 = pnand %p3404_p8, %p3833_p5  ;;  %p3412_p2 = scmp.lt.s32.totalorder %s3410_s6, %s3403_s1 }
  0xcd   : > { %p3407_p12 = pneg %p3406_p10  ;;  %p3413_p3 = por %p3412_p2, %p3411_p13 }
  0xcf   : > { %p3414_p6 = pnand %p3413_p3, %p3407_p12 }
  0xd1   : > { %3417 = shalt.err (!%p3414_p6)
}
  0xd2   : > { %3107 = dma.hbm_to_vmem [thread:$0]  (!%p3803_p0), %s807_s0, 16, %s810_s29, %s3827_s17  }
  0xd3   : > { %s4556_s13 = sld [smem:[#allocation44_spill]]  ;;  %s827_s28 = scalar_lea.vmem [#allocation19], %s3799_s30 }
  0xd4   : > { %s834_s18 = sshll.u32 %s827_s28, 4  ;;  %s835_s18 = int_to_ptr.vmem [resolvable:$true] %s834_s18 }
  0xd9   : > { %s832_s27 = scalar_lea.hbm %s4556_s13, %s3818_s25  ;;  %s3423_s20 = scalar_lea.hbm %s4556_s13, 32 }
  0xda   : > { %s3418_s22 = scalar_lea.hbm %s832_s27, 16  ;;  %p3424_p9 = scmp.lt.s32.totalorder %s832_s27, %s4556_s13 }
  0xdb   : > { %p3419_p7 = scmp.ne.s32.totalorder %s832_s27, %s3418_s22  ;;  %p3425_p1 = scmp.lt.s32.totalorder %s3423_s20, %s3418_s22 }
  0xdd   : > { %p3421_p11 = pnand %p3419_p7, %p3833_p5  ;;  %p3426_p8 = por %p3425_p1, %p3424_p9 }
  0xdf   : > { %p3422_p4 = pneg %p3421_p11 }
  0xe1   : > { %p3427_p10 = pnand %p3426_p8, %p3422_p4 }
  0xe3   : > { %3430 = shalt.err (!%p3427_p10)
}
  0xe4   : > { %s3431_s25 = scalar_lea.vmem %s835_s18, 16  ;;  %s3593_s0 = smov [#allocation19]  }
  0xe5   : > { %p3432_p12 = scmp.ne.s32.totalorder %s835_s18, %s3431_s25  ;;  %s3436_s29 = sshll.u32 %s3593_s0, 4  ;;  %s3437_s29 = int_to_ptr.vmem [resolvable:$false] %s3436_s29 }
  0xe6   : > { %s3438_s10 = scalar_lea.vmem %s3437_s29, 32  ;;  %p3439_p3 = scmp.lt.s32.totalorder %s835_s18, %s3437_s29 }
  0xe7   : > { %p3434_p13 = pnand %p3432_p12, %p3833_p5  ;;  %p3440_p6 = scmp.lt.s32.totalorder %s3438_s10, %s3431_s25 }
  0xe9   : > { %p3435_p2 = pneg %p3434_p13  ;;  %p3441_p7 = por %p3440_p6, %p3439_p3 }
  0xeb   : > { %p3442_p11 = pnand %p3441_p7, %p3435_p2 }
  0xed   : > { %3445 = shalt.err (!%p3442_p11)
}
  0xee   : > { %3110 = dma.hbm_to_vmem [thread:$0]  (!%p3803_p0), %s832_s27, 16, %s835_s18, %s3827_s17  }
  0xef   : > { %s3594_s4 = smov [#allocation12]   ;;  %s2785_s22 = sshll.u32 %s3799_s30, 4 }
  0xf0   : > { %s694_s28 = sshll.u32 %s3594_s4, 4  ;;  %p4557_p9 = scmp.ne.s32.totalorder %s4547_s2, 0  ;;  %s695_s28 = int_to_ptr.vmem [resolvable:$true] %s694_s28 }
  0xf1   : > { %s3457_s16 = scalar_lea.vmem %s695_s28, 16  ;;  %s3464_s1 = scalar_lea.vmem %s695_s28, 32 }
  0xf2   : > { %p3458_p4 = scmp.ne.s32.totalorder %s695_s28, %s3457_s16  ;;  %p4558_p1 = pneg %p4557_p9 }
  0xf3   : > { %p3465_p12 = scmp.lt.s32.totalorder %s695_s28, %s695_s28  ;;  %p3466_p13 = scmp.lt.s32.totalorder %s3464_s1, %s3457_s16 }
  0xf4   : > { %p3460_p8 = pnand %p3458_p4, %p4558_p1 }
  0xf5   : > { %p3467_p2 = por %p3466_p13, %p3465_p12 }
  0xf6   : > { %p3461_p10 = pneg %p3460_p8 }
  0xf8   : > { %p3468_p3 = pnand %p3467_p2, %p3461_p10 }
  0xfa   : > { %3471 = shalt.err (!%p3468_p3)
}
  0xfb   : > { %s4559_s18 = sld [smem:[#allocation35_spill]]  ;;  %s2886_s30 = sshll.u32 %s3576_s26, 8 }
  0xfc   : > { %s891_s14 = scalar_lea.vmem [#allocation20], %s2785_s22  ;;  %s4560_s21 = sld [smem:[#allocation52_spill]] }
  0xfd   : > { %s898_s6 = sshll.u32 %s891_s14, 4  ;;  %s899_s6 = int_to_ptr.vmem [resolvable:$true] %s898_s6 }
 0x101   : > { %3091 = dma.hbm_to_vmem [thread:$0]  (!%p4557_p9), %s4559_s18, 16, %s695_s28, [#allocation13]  }
 0x102   : > { %s3976_s29 = scalar_lea.hbm %s4560_s21, %s2886_s30  ;;  %s3477_s26 = scalar_lea.hbm %s4560_s21, 512 }
 0x103   : > { %s3472_s10 = scalar_lea.hbm %s3976_s29, 256  ;;  %p3478_p4 = scmp.lt.s32.totalorder %s3976_s29, %s4560_s21 }
 0x104   : > { %p3473_p6 = scmp.ne.s32.totalorder %s3976_s29, %s3472_s10  ;;  %p3479_p9 = scmp.lt.s32.totalorder %s3477_s26, %s3472_s10 }
 0x106   : > { %p3475_p7 = pnand %p3473_p6, %p3833_p5  ;;  %p3480_p1 = por %p3479_p9, %p3478_p4 }
 0x108   : > { %p3476_p11 = pneg %p3475_p7 }
 0x10a   : > { %p3481_p8 = pnand %p3480_p1, %p3476_p11 }
 0x10c   : > { %3484 = shalt.err (!%p3481_p8)
}
 0x10d   : > { %s3485_s16 = scalar_lea.vmem %s899_s6, 256  ;;  %s3595_s1 = smov [#allocation20]  }
 0x10e   : > { %p3486_p10 = scmp.ne.s32.totalorder %s899_s6, %s3485_s16  ;;  %s3490_s20 = sshll.u32 %s3595_s1, 4  ;;  %s3491_s20 = int_to_ptr.vmem [resolvable:$false] %s3490_s20 }
 0x10f   : > { %s3492_s27 = scalar_lea.vmem %s3491_s20, 512  ;;  %p3493_p2 = scmp.lt.s32.totalorder %s899_s6, %s3491_s20 }
 0x110   : > { %p3488_p12 = pnand %p3486_p10, %p3833_p5  ;;  %p3494_p3 = scmp.lt.s32.totalorder %s3492_s27, %s3485_s16 }
 0x112   : > { %p3489_p13 = pneg %p3488_p12  ;;  %p3495_p6 = por %p3494_p3, %p3493_p2 }
 0x114   : > { %p3496_p7 = pnand %p3495_p6, %p3489_p13 }
 0x116   : > { %3499 = shalt.err (!%p3496_p7)
}
 0x117   : > { %3113 = dma.hbm_to_vmem [thread:$0]  (!%p3803_p0), %s3976_s29, 256, %s899_s6, %s3827_s17, %s3590_s24, %s3590_s24, %s3591_s23  }
 0x118   : > { %p4561_p5 = scmp.ne.s32.totalorder %s4546_s5, 0 }
 0x119   : > { %p4562_p11 = scmp.eq.s32.totalorder (!%p4561_p5), %s3755_s19, 0 }
 0x11a   : > { %916 = sbr.rel (%p4561_p5) target bundleno = 2687 (0xa7f), region = 116 }
 0x11f   : > { %3547 = dma.done.wait (%p4562_p11), [#allocation10], 256   ;;  %p4563_p4 = pmov %p4562_p11 }
 0x121   : > { %3549 = vsyncadd (%p4563_p4), [#allocation10], 4294967040  ;;  %p4564_p9 = pmov %p4563_p4 }
 0x122   : > { %p4565_p1 = pmov %p4563_p4 }
 0x123   : > { %3551 = dma.done.wait (%p4564_p9), [#allocation13], 16  }
 0x124   : > { %3553 = vsyncadd (%p4565_p1), [#allocation13], 4294967280  ;;  %s926_s8 = sand.u32 1, %s3755_s19   ;;  %s4010_s17 = sand.u32 1, %s3568_s7  }
 0x125   : > { %s927_s5 = scalar_lea.sflag [#allocation10], %s926_s8  ;;  %p4566_p0 = scmp.ne.s32.totalorder %s4545_s9, 0 }
 0x127   : > { %3555 = dma.done.wait (%p4566_p0), %s927_s5, 464  }
 0x128   : > { %3557 = vsyncadd (%p4566_p0), %s927_s5, 4294966832  ;;  %s2791_s24 = sshll.u32 %s4010_s17, 3  ;;  %s2792_s23 = sshll.u32 %s4010_s17, 4 }
 0x129   : > { %p1107_p8 = scmp.lt.s32.totalorder %s3755_s19, 1  ;;  %s4568_s29 = sld [smem:[#allocation36_spill]] }
 0x12a   : > { %s4569_s26 = sld [smem:[#allocation38_spill]]  ;;  %s937_s0 = scalar_lea.vmem [#allocation15], %s4010_s17 }
 0x12b   : > { %s4021_s18 = scalar_select %p1107_p8, %s3755_s19, 1 }
 0x12c   : > { %s4570_s12 = sld [smem:[#allocation43_spill]]  ;;  %s945_s6 = scalar_lea.vmem [#allocation16], %s4010_s17 }
 0x12d   : > { %s2887_s9 = sshll.u32 %s4021_s18, 4  ;;  %s4571_s8 = sld [smem:[#allocation45_spill]] }
 0x12e   : > { %s4573_s3 = sld [smem:[#allocation48_spill]]  ;;  %s4079_s4 = scalar_lea.vmem [#allocation20], %s2792_s23 }
 0x12f   : > { %s4031_s10 = scalar_lea.vmem %s4568_s29, %s2887_s9  ;;  %s4574_s11 = sld [smem:[#allocation49_spill]] }
 0x130   : > { %s4036_s28 = scalar_lea.vmem %s4569_s26, %s2887_s9  ;;  %s4575_s13 = sld [smem:[#allocation50_spill]] }
 0x131   : > { %s4577_s14 = sld [smem:[#allocation53_spill]]  ;;  %s970_s29 = scalar_lea.vmem [#allocation19], %s4010_s17 }
 0x132   : > { %s4041_s1 = scalar_lea.vmem %s4570_s12, %s2887_s9  ;;  %p4578_p10 = scmp.ne.s32.totalorder %s3755_s19, 0 }
 0x133   : > { %s4046_s5 = scalar_lea.vmem %s4571_s8, %s2887_s9  ;;  %s4576_s8 = sld [smem:[#allocation51_spill]] }
 0x134   : > { %s4055_s2 = scalar_lea.vmem %s4573_s3, %s2887_s9  ;;  %s4075_s3 = scalar_lea.vmem [#allocation17], %s2791_s24 }
 0x135   : > { %s1140_s22 = scalar_lea.vmem %s4574_s11, %s4021_s18  ;;  %s962_s9 = scalar_lea.vmem [#allocation18], %s4010_s17 }
 0x136   : > { %s1143_s21 = scalar_lea.vmem %s4575_s13, %s4021_s18  ;;  %1154 = sbr.rel (%p4578_p10) target bundleno = 536 (0x218), region = 156 }
 0x137   : > { %s1149_s25 = scalar_lea.vmem %s4577_s14, %s4021_s18  ;;  %s4579_s13 = sld [smem:[#allocation34_spill]] (!%p4578_p10) }
 0x138   : > { %s4580_s16 = sld [smem:[#allocation32_spill]] (!%p4578_p10) }
 0x139   : > { %s1146_s7 = scalar_lea.vmem %s4576_s8, %s4021_s18 }
 0x13b   : > { %vm1219_vm0 = vcmask 1044480   ;;  %v1155_v1 = vld [vmem:[#allocation9] sm:$0xff]  ;;  %v1156_v2 = vld [vmem:[#allocation9 + $0x8] sm:$0xff]  ;;  %vm1157_vm1 = vcmask 261120   ;;  %vm1200_vm2 = vcmask 211968   ;;  %vm1304_vm3 = vcmask 130048  }
 0x13c   : > { %1158 = vst.msk [vmem:[#allocation3] sm:$0xff] %vm1157_vm1, %v1155_v1  ;;  %1159 = vst.msk [vmem:[#allocation3 + $0x8] sm:$0xff] %vm1157_vm1, %v1156_v2  ;;  %v2804_v23 = vld [vmem:[#allocation12] ss:$0 sm:$0xff] }
 0x13d   : > { %v3175_v0 = vld [vmem:[%s4579_s13 + $0x8] sm:$0x1f]   ;;  %v3176_v4 = vld [vmem:[%s4579_s13] sm:$0xff]  }
 0x13e   : > { %3058 = vmatprep.subr.msk.bf16.mxu1 %vm1219_vm0, %v3175_v0  ;;  %v1221_v3 = vsel %vm1219_vm0, %v3175_v0, 0  ;;  %3057 = vmatprep.subr.msk.bf16.mxu0 %vm1219_vm0, %v3175_v0  ;;  %v1164_v5 = vld [vmem:[%s4580_s16 + $0x20] sm:$0xff]  ;;  %v1165_v6 = vld [vmem:[%s4580_s16 + $0x28] sm:$0xff]  ;;  %v1166_v7 = vld [vmem:[%s4580_s16 + $0x30] sm:$0xff] }
 0x13f   : > { %3055 = vmatpush3.bf16.msra.mxu1 %v1221_v3  ;;  %2944 = vmatpush3.bf16.msra.mxu0 %v1221_v3  ;;  %v1167_v8 = vld [vmem:[%s4580_s16 + $0x38] sm:$0xff]  ;;  %v1174_v9 = vpack.c.bf16 %v1165_v6, %v1164_v5  ;;  %v1160_v10 = vld [vmem:[%s4580_s16] sm:$0xff]  ;;  %v1161_v11 = vld [vmem:[%s4580_s16 + $0x8] sm:$0xff] }
 0x140   : > { %3054 = vmatprep.subr.bf16.mxu1 %v3176_v4  ;;  %2945 = vmatprep.subr.bf16.mxu0 %v3176_v4  ;;  %v1162_v12 = vld [vmem:[%s4580_s16 + $0x10] sm:$0xff]  ;;  %v1172_v13 = vpack.c.bf16 %v1161_v11, %v1160_v10  ;;  %v1163_v14 = vld [vmem:[%s4580_s16 + $0x18] sm:$0xff]  ;;  %v1168_v15 = vld [vmem:[%s4580_s16 + $0x40] sm:$0xff]  ;;  %v1175_v17 = vpack.c.bf16 %v1167_v8, %v1166_v7 }
 0x141   : > { %v1169_v16 = vld [vmem:[%s4580_s16 + $0x48] sm:$0xff]  ;;  %2951 = vmatprep.mubr.msk.bf16.mxu1 %vm1200_vm2, %v1174_v9  ;;  %v1173_v18 = vpack.c.bf16 %v1163_v14, %v1162_v12  ;;  %v1170_v20 = vld [vmem:[%s4580_s16 + $0x50] sm:$0xff]  ;;  %v1171_v21 = vld [vmem:[%s4580_s16 + $0x58] sm:$0xff] }
 0x142   : > { %v1176_v19 = vpack.c.bf16 %v1169_v16, %v1168_v15  ;;  %2947 = vmatprep.mubr.msk.bf16.mxu0 %vm1200_vm2, %v1172_v13  ;;  %v1177_v22 = vpack.c.bf16 %v1171_v21, %v1170_v20 }
 0x143   : > { %3056 = vmatpush3.bf16.msra.mxu1 %v3176_v4  ;;  %2946 = vmatpush3.bf16.msra.mxu0 %v3176_v4 }
 0x146   : > { %2952 = vmatmul.mubr.msk.bf16.vlgmr.msra.gmra.mxu1 %vm1200_vm2, %v1175_v17  ;;  %2948 = vmatmul.mubr.msk.bf16.vlgmr.msra.gmra.mxu0 %vm1200_vm2, %v1173_v18 }
 0x147   : > { %2955 = vmatprep.mubr.msk.bf16.mxu1 %vm1200_vm2, %v1176_v19 }
 0x14e   : > { %2956 = vmatmul.mubr.msk.bf16.gmra.mxu1 %vm1200_vm2, %v1177_v22 }
 0x206   : > { %v2953_v24 = vpop.f32.mrf.mxu1  ;;  %v2949_v25 = vpop.f32.mrf.mxu0 }
 0x207   : > { %v1282_v26 = vadd.f32 %v2953_v24, %v2804_v23  ;;  %v1266_v27 = vadd.f32 %v2949_v25, %v2804_v23 }
 0x208   : > { %v1273_v28 = vpop.f32.mrf.mxu1  ;;  %v1257_v29 = vpop.f32.mrf.mxu0 }
 0x209   : > { %1311 = vst.msk [vmem:[#allocation2 + $0x30] sm:$0xff] %vm1304_vm3, %v1282_v26  ;;  %1307 = vst.msk [vmem:[#allocation2 + $0x10] sm:$0xff] %vm1304_vm3, %v1266_v27  ;;  %v1274_v30 = vadd.f32 %v2804_v23, %v1273_v28  ;;  %v1258_v31 = vadd.f32 %v2804_v23, %v1257_v29 }
 0x20a   : > { %v2954_v32 = vpop.f32.mrf.mxu1  ;;  %v2950_v33 = vpop.f32.mrf.mxu0 }
 0x20b   : > { %1309 = vst.msk [vmem:[#allocation2 + $0x20] sm:$0xff] %vm1304_vm3, %v1274_v30  ;;  %1305 = vst.msk [vmem:[#allocation2] sm:$0xff] %vm1304_vm3, %v1258_v31  ;;  %v1285_v34 = vadd.f32 %v2954_v32, %v2804_v23  ;;  %v1269_v35 = vadd.f32 %v2950_v33, %v2804_v23 }
 0x20c   : > { %v1276_v36 = vpop.f32.mrf.mxu1  ;;  %v1260_v37 = vpop.f32.mrf.mxu0 }
 0x20d   : > { %1312 = vst.msk [vmem:[#allocation2 + $0x38] sm:$0xff] %vm1304_vm3, %v1285_v34  ;;  %1308 = vst.msk [vmem:[#allocation2 + $0x18] sm:$0xff] %vm1304_vm3, %v1269_v35  ;;  %v1277_v38 = vadd.f32 %v2804_v23, %v1276_v36  ;;  %v1261_v39 = vadd.f32 %v2804_v23, %v1260_v37 }
 0x20e   : > { %v2957_v40 = vpop.f32.mrf.mxu1 }
 0x20f   : > { %1310 = vst.msk [vmem:[#allocation2 + $0x28] sm:$0xff] %vm1304_vm3, %v1277_v38  ;;  %1306 = vst.msk [vmem:[#allocation2 + $0x8] sm:$0xff] %vm1304_vm3, %v1261_v39  ;;  %v1298_v41 = vadd.f32 %v2957_v40, %v2804_v23 }
 0x210   : > { %v1289_v42 = vpop.f32.mrf.mxu1 }
 0x211   : > { %1315 = vst.msk [vmem:[#allocation2 + $0x50] sm:$0xff] %vm1304_vm3, %v1298_v41  ;;  %v1290_v43 = vadd.f32 %v2804_v23, %v1289_v42 }
 0x212   : > { %v2958_v44 = vpop.f32.mrf.mxu1 }
 0x213   : > { %1313 = vst.msk [vmem:[#allocation2 + $0x40] sm:$0xff] %vm1304_vm3, %v1290_v43  ;;  %v1301_v45 = vadd.f32 %v2958_v44, %v2804_v23 }
 0x214   : > { %v1292_v46 = vpop.f32.mrf.mxu1 }
 0x215   : > { %1316 = vst.msk [vmem:[#allocation2 + $0x58] sm:$0xff] %vm1304_vm3, %v1301_v45  ;;  %v1293_v47 = vadd.f32 %v2804_v23, %v1292_v46 }
 0x217   : > { %1314 = vst.msk [vmem:[#allocation2 + $0x48] sm:$0xff] %vm1304_vm3, %v1293_v47 }
 0x218 PF: > { %v3177_v48 = vld [vmem:[%s4031_s10 + $0x8] sm:$0xff]   ;;  %v3596_v49 = vmov 0.0   ;;  %v3178_v50 = vld [vmem:[%s4031_s10] sm:$0xff]   ;;  %vm3597_vm4 = vmmov 0   ;;  %vm1354_vm5 = vcmask 261120   ;;  %vm1510_vm6 = vcmask 130048  }
 0x219   : > { %2959 = vmatprep.subr.bf16.mxu0 %v3596_v49  ;;  %2967 = vmatprep.subr.bf16.mxu1 %v3596_v49  ;;  %v4149_v51 = vld [vmem:[#allocation3] sm:$0xff]  ;;  %v4151_v52 = vld [vmem:[#allocation3 + $0x8] sm:$0xff]  ;;  %v1321_v59 = vld [vmem:[#allocation2 + $0x10] sm:$0xff]  ;;  %s3598_s10 = smov 32   ;;  %vm1499_vm7 = vcmask 523520  }
 0x21a   : > { %2960 = vmatpush3.bf16.msra.mxu0 %v3177_v48  ;;  %2963 = vmatprep.mubr.msk.bf16.mxu0 %vm3597_vm4, %v3596_v49  ;;  %v3179_v53 = vld [vmem:[%s4075_s3] sm:$0xff]   ;;  %v1320_v55 = vld [vmem:[#allocation2 + $0x8] sm:$0xff]  ;;  %v1331_v56 = vpack.c.bf16 %v4151_v52, %v4149_v51  ;;  %v1325_v1 = vld [vmem:[#allocation2 + $0x30] sm:$0xff]  ;;  %s3599_s3 = smov 96  }
 0x21b   : > { %2961 = vmatprep.subr.bf16.mxu0 %v3596_v49  ;;  %v1319_v54 = vld [vmem:[#allocation2] sm:$0xff]  ;;  %2971 = vmatprep.mubr.msk.bf16.mxu1 %vm3597_vm4, %v3596_v49  ;;  %v1322_v60 = vld [vmem:[#allocation2 + $0x18] sm:$0xff]  ;;  %v1324_v62 = vld [vmem:[#allocation2 + $0x28] sm:$0xff] }
 0x21c   : > { %v1332_v57 = vpack.c.bf16 %v1320_v55, %v1319_v54  ;;  %v2821_v58 = vld [vmem:[%s945_s6] ss:$0 sm:$0xff]  ;;  %v1333_v63 = vpack.c.bf16 %v1322_v60, %v1321_v59  ;;  %v1326_v2 = vld [vmem:[#allocation2 + $0x38] sm:$0xff]  ;;  %v1329_v7 = vld [vmem:[#allocation2 + $0x50] sm:$0xff]  ;;  %s4581_s6 = scalar_lea.vmem [#allocation14], %s4010_s17  ;;  %s3578_s17 = smov 0  }
 0x21d   : > { %1484 = vrot.lane.b32.xlu0 %v2821_v58, %s3598_s10  ;;  %v1323_v61 = vld [vmem:[#allocation2 + $0x20] sm:$0xff]  ;;  %v1335_v5 = vpack.c.bf16 %v1326_v2, %v1325_v1  ;;  %v1330_v8 = vld [vmem:[#allocation2 + $0x58] sm:$0xff]  ;;  %v3180_v10 = vld [vmem:[%s4036_s28 + $0x8] sm:$0xff]  }
 0x21e   : > { %2962 = vmatpush3.bf16.msra.mxu0 %v3178_v50  ;;  %v1334_v0 = vpack.c.bf16 %v1324_v62, %v1323_v61  ;;  %v1327_v3 = vld [vmem:[#allocation2 + $0x40] sm:$0xff]  ;;  %v1328_v4 = vld [vmem:[#allocation2 + $0x48] sm:$0xff]  ;;  %v1337_v9 = vpack.c.bf16 %v1330_v8, %v1329_v7  ;;  %2968 = vmatpush3.bf16.msra.mxu1 %v3180_v10 }
 0x21f   : > { %2975 = vmatprep.subr.bf16.mxu0 %v3179_v53  ;;  %v1336_v6 = vpack.c.bf16 %v1328_v4, %v1327_v3  ;;  %2969 = vmatprep.subr.bf16.mxu1 %v3596_v49  ;;  %v3181_v11 = vld [vmem:[%s4036_s28] sm:$0xff]   ;;  %v3182_v12 = vld [vmem:[%s4041_s1 + $0x8] sm:$0xff]  }
 0x220   : > { %v2816_v15 = vld [vmem:[%s4581_s6] ss:$0 sm:$0xff] }
 0x221   : > { %2964 = vmatmul.mubr.msk.bf16.vlgmr.msra.gmra.mxu0 %vm1354_vm5, %v1331_v56  ;;  %v3183_v27 = vld [vmem:[%s4041_s1] sm:$0xff]  }
 0x222   : > { %2976 = vmatpush3.bf16.msra.mxu0 %v3179_v53  ;;  %2977 = vmatprep.mubr.msk.bf16.mxu0 %vm1510_vm6, %v1332_v57  ;;  %v2829_v29 = vld [vmem:[%s962_s9] ss:$0 sm:$0xff] }
 0x223   : > { %2970 = vmatpush3.bf16.msra.mxu1 %v3181_v11 }
 0x224   : > { %2989 = vmatprep.subr.bf16.mxu1 %v3182_v12 }
 0x229   : > { %2978 = vmatmul.mubr.msk.bf16.vlgmr.msra.gmra.mxu0 %vm1510_vm6, %v1333_v63 }
 0x22a   : > { %2981 = vmatprep.mubr.msk.bf16.mxu0 %vm1510_vm6, %v1334_v0 }
 0x231   : > { %2982 = vmatmul.mubr.msk.bf16.gmra.mxu0 %vm1510_vm6, %v1335_v5 }
 0x232   : > { %2985 = vmatprep.mubr.msk.bf16.mxu0 %vm1510_vm6, %v1336_v6 }
 0x239   : > { %2986 = vmatmul.mubr.msk.bf16.gmra.mxu0 %vm1510_vm6, %v1337_v9  ;;  %v2817_v9 = vld [vmem:[%s937_s0] ss:$0 sm:$0xff] }
 0x28f   : > { %v1485_v13 = vpop.permute.xlu0 %1484 }
 0x2e1   : > { %v1392_v14 = vpop.f32.mrf.mxu0 }
 0x2e2   : > { %v4175_v16 = vadd.f32 %v1485_v13, %v1392_v14  ;;  %1493 = vrot.lane.b32.xlu0 %v1392_v14, %s3599_s3  ;;  %v1406_v18 = vadd.f32 %v2816_v15, %v1392_v14 }
 0x2e3   : > { %v2965_v17 = vpop.f32.mrf.mxu0 }
 0x2e4   : > { %v1408_v23 = vmax.f32 %v1406_v18, 0.0 }
 0x2e5   : > { %v1395_v19 = vpop.f32.mrf.mxu0 }
 0x2e6   : > { %v1407_v20 = vadd.f32 %v2816_v15, %v1395_v19  ;;  %v4178_v21 = vadd.f32 %v1485_v13, %v1395_v19  ;;  %1495 = vrot.lane.b32.xlu1 %v1395_v19, %s3599_s3  ;;  %v2830_v19 = vld [vmem:[%s970_s29] ss:$0 sm:$0xff] }
 0x2e7   : > { %v2966_v22 = vpop.f32.mrf.mxu0 }
 0x2e8   : > { %v1409_v24 = vmax.f32 %v1407_v20, 0.0 }
 0x2e9   : > { %v4181_v25 = vpop.f32.mrf.mxu0 }
 0x2ea   : > { %v1410_v26 = vpack.c.bf16 %v1409_v24, %v1408_v23  ;;  %v1619_v33 = vadd.f32 %v4181_v25, %v2829_v29 }
 0x2eb   : > { %v4184_v28 = vpop.f32.mrf.mxu0 }
 0x2ec   : > { %2972 = vmatmul.mubr.msk.bf16.vlgmr.msra.gmra.mxu1 %vm1354_vm5, %v1410_v26  ;;  %v1617_v31 = vadd.f32 %v2829_v29, %v4184_v28  ;;  %v1631_v40 = vmax.f32 %v1619_v33, 0.0 }
 0x2ed   : > { %v4189_v30 = vpop.f32.mrf.mxu0  ;;  %2990 = vmatpush3.bf16.msra.mxu1 %v3182_v12 }
 0x2ee   : > { %v1620_v32 = vadd.f32 %v4189_v30, %v2829_v29  ;;  %2991 = vmatprep.subr.bf16.mxu1 %v3183_v27  ;;  %v1629_v38 = vmax.f32 %v1617_v31, 0.0 }
 0x2ef   : > { %v4194_v34 = vpop.f32.mrf.mxu0 }
 0x2f0   : > { %v1618_v35 = vadd.f32 %v2829_v29, %v4194_v34  ;;  %v1632_v36 = vmax.f32 %v1620_v32, 0.0 }
 0x2f1   : > { %v4197_v37 = vpop.f32.mrf.mxu0  ;;  %2992 = vmatpush3.bf16.msra.mxu1 %v3183_v27 }
 0x2f2   : > { %v1630_v39 = vmax.f32 %v1618_v35, 0.0  ;;  %v1642_v43 = vpack.c.bf16 %v1632_v36, %v1631_v40  ;;  %v1623_v47 = vadd.f32 %v4197_v37, %v2829_v29 }
 0x2f3   : > { %v4199_v41 = vpop.f32.mrf.mxu0 }
 0x2f4   : > { %v1641_v42 = vpack.c.bf16 %v1630_v39, %v1629_v38  ;;  %v1621_v45 = vadd.f32 %v2829_v29, %v4199_v41  ;;  %v1635_v57 = vmax.f32 %v1623_v47, 0.0 }
 0x2f5   : > { %v4201_v44 = vpop.f32.mrf.mxu0 }
 0x2f6   : > { %v1624_v46 = vadd.f32 %v4201_v44, %v2829_v29  ;;  %2993 = vmatprep.mubr.msk.bf16.mxu1 %vm1354_vm5, %v1641_v42  ;;  %v1633_v55 = vmax.f32 %v1621_v45, 0.0 }
 0x2f7   : > { %v4207_v48 = vpop.f32.mrf.mxu0  ;;  %2994 = vmatmul.mubr.msk.bf16.vlgmr.msra.gmra.mxu1 %vm1354_vm5, %v1642_v43 }
 0x2f8   : > { %v1622_v50 = vadd.f32 %v2829_v29, %v4207_v48  ;;  %v1636_v53 = vmax.f32 %v1624_v46, 0.0 }
 0x2f9   : > { %v4211_v54 = vpop.f32.mrf.mxu0 }
 0x2fa   : > { %v1634_v56 = vmax.f32 %v1622_v50, 0.0  ;;  %v1644_v60 = vpack.c.bf16 %v1636_v53, %v1635_v57  ;;  %v1627_v0 = vadd.f32 %v4211_v54, %v2829_v29 }
 0x2fb   : > { %v4213_v58 = vpop.f32.mrf.mxu0 }
 0x2fc   : > { %v1643_v59 = vpack.c.bf16 %v1634_v56, %v1633_v55  ;;  %v1625_v62 = vadd.f32 %v2829_v29, %v4213_v58  ;;  %v1639_v6 = vmax.f32 %v1627_v0, 0.0 }
 0x2fd   : > { %v4215_v61 = vpop.f32.mrf.mxu0 }
 0x2fe   : > { %v1628_v63 = vadd.f32 %v4215_v61, %v2829_v29  ;;  %2997 = vmatprep.mubr.msk.bf16.mxu1 %vm1354_vm5, %v1643_v59  ;;  %v1637_v4 = vmax.f32 %v1625_v62, 0.0 }
 0x2ff   : > { %v4221_v1 = vpop.f32.mrf.mxu0  ;;  %2998 = vmatmul.mubr.msk.bf16.gmra.mxu1 %vm1354_vm5, %v1644_v60 }
 0x300   : > { %v1626_v2 = vadd.f32 %v2829_v29, %v4221_v1  ;;  %v1640_v3 = vmax.f32 %v1628_v63, 0.0 }
 0x302   : > { %v1638_v5 = vmax.f32 %v1626_v2, 0.0  ;;  %v1646_v8 = vpack.c.bf16 %v1640_v3, %v1639_v6 }
 0x304   : > { %v1645_v7 = vpack.c.bf16 %v1638_v5, %v1637_v4 }
 0x306   : > { %3001 = vmatprep.mubr.msk.bf16.mxu1 %vm1354_vm5, %v1645_v7 }
 0x307   : > { %3002 = vmatmul.mubr.msk.bf16.gmra.mxu1 %vm1354_vm5, %v1646_v8 }
 0x354   : > { %v1494_v13 = vpop.permute.xlu0 %1493 }
 0x358   : > { %v1496_v18 = vpop.permute.xlu1 %1495 }
 0x3ac   : > { %v1471_v10 = vpop.f32.mrf.mxu1 }
 0x3ad   : > { %v1472_v11 = vadd.f32 %v2817_v9, %v1471_v10 }
 0x3ae   : > { %v2973_v12 = vpop.f32.mrf.mxu1 }
 0x3af   : > { %1489 = vst.msk [vmem:[#allocation4] sm:$0xff] %vm1354_vm5, %v1472_v11 }
 0x3b0   : > { %1500 = vst.msk [vmem:[#allocation4] sm:$0xff] %vm1499_vm7, %v1494_v13  ;;  %v1474_v14 = vpop.f32.mrf.mxu1 }
 0x3b1   : > { %v1475_v15 = vadd.f32 %v2817_v9, %v1474_v14 }
 0x3b2   : > { %v2974_v17 = vpop.f32.mrf.mxu1 }
 0x3b3   : > { %1490 = vst.msk [vmem:[#allocation4 + $0x8] sm:$0xff] %vm1354_vm5, %v1475_v15 }
 0x3b4   : > { %1501 = vst.msk [vmem:[#allocation4 + $0x8] sm:$0xff] %vm1499_vm7, %v1496_v18 }
 0x3b7   : > { %v2995_v20 = vpop.f32.mrf.mxu1 }
 0x3b8   : > { %v4233_v22 = vadd.f32 %v2995_v20, %v2830_v19 }
 0x3b9   : > { %v1722_v23 = vpop.f32.mrf.mxu1 }
 0x3ba   : > { %v4235_v24 = vadd.f32 %v2830_v19, %v1722_v23 }
 0x3bb   : > { %v2996_v26 = vpop.f32.mrf.mxu1 }
 0x3bc   : > { %v4237_v27 = vadd.f32 %v2996_v26, %v2830_v19 }
 0x3bd   : > { %v1725_v29 = vpop.f32.mrf.mxu1 }
 0x3be   : > { %v4239_v31 = vadd.f32 %v2830_v19, %v1725_v29 }
 0x3bf   : > { %v2999_v32 = vpop.f32.mrf.mxu1 }
 0x3c0   : > { %v4241_v33 = vadd.f32 %v2999_v32, %v2830_v19 }
 0x3c1   : > { %v1738_v35 = vpop.f32.mrf.mxu1 }
 0x3c2   : > { %v4243_v36 = vadd.f32 %v2830_v19, %v1738_v35 }
 0x3c3   : > { %v3000_v38 = vpop.f32.mrf.mxu1 }
 0x3c4   : > { %v4245_v39 = vadd.f32 %v3000_v38, %v2830_v19 }
 0x3c5   : > { %v1741_v40 = vpop.f32.mrf.mxu1 }
 0x3c6   : > { %v4247_v42 = vadd.f32 %v2830_v19, %v1741_v40 }
 0x3c7   : > { %v3003_v43 = vpop.f32.mrf.mxu1 }
 0x3c8   : > { %v4249_v45 = vadd.f32 %v3003_v43, %v2830_v19 }
 0x3c9   : > { %v1754_v46 = vpop.f32.mrf.mxu1 }
 0x3ca   : > { %v4251_v47 = vadd.f32 %v2830_v19, %v1754_v46 }
 0x3cb   : > { %v3004_v50 = vpop.f32.mrf.mxu1 }
 0x3cc   : > { %v4253_v53 = vadd.f32 %v3004_v50, %v2830_v19 }
 0x3cd   : > { %v1757_v55 = vpop.f32.mrf.mxu1 }
 0x3ce   : > { %v4255_v56 = vadd.f32 %v2830_v19, %v1757_v55 }
 0x3cf LB: >> { %s1775_s28 = sld [smem:[#allocation8 + %s3580_s17]]  ;;  %vm1779_vm8 = vcmask 516096   ;;  %s1778_s0 = scalar_lea.vmem [#allocation5], %s3580_s17  ;;  %s3580_s17 = sphi %s3578_s17, %s1774_s17  }
 0x3d0   : >> { %s1774_s17 = sadd.s32 1, %s3580_s17  }
 0x3d1   : >> { %p1771_p12 = scmp.ge.s32.totalorder %s1774_s17, 96  }
 0x3d2   : > { %s4582_s20 = sld [smem:[#allocation47_spill]] (%p1771_p12)  ;;  %v3184_v60 = vld [vmem:[%s4055_s2 + $0x8] sm:$0xff] (%p1771_p12)   ;;  %v3185_v62 = vld [vmem:[%s4055_s2] sm:$0xff] (%p1771_p12)   ;;  %p2880_p13 = scmp.ne.s32.totalorder (%p1771_p12), %s3755_s19, 1 }
 0x3d3   : > { %1773 = sbr.rel (!%p1771_p12) target bundleno = 975 (0x3cf), region = 276  ;;  %3021 = vmatprep.subr.bf16.mxu1 (%p1771_p12), %v3184_v60  ;;  %s4585_s14 = sld [smem:[#allocation46_spill]] (%p1771_p12) }
 0x3d4   : > { %3022 = vmatpush3.bf16.msra.mxu1 (%p1771_p12), %v3184_v60 }
 0x3d5   : >> { %s1776_s1 = scalar_lea.vmem [#allocation4], %s1775_s28  ;;  %3023 = vmatprep.subr.bf16.mxu1 (%p1771_p12), %v3185_v62 }
 0x3d6   : >> { %v1777_v57 = vld [vmem:[%s1776_s1] sm:$0x1] }
 0x3d7   : >> { %1780 = vst.msk [vmem:[%s1778_s0] sm:$0x1] %vm1779_vm8, %v1777_v57 }
 0x3d8   : > { %s4583_s27 = scalar_lea.vmem %s4582_s20, %s4021_s18  ;;  %3024 = vmatpush3.bf16.msra.mxu1 %v3185_v62 }
 0x3d9   : > { %v2848_v59 = vld [vmem:[%s4583_s27] ss:$0 sm:$0xff]  ;;  %3045 = vmatprep.subr.bf16.mxu1 %v3596_v49  ;;  %s4586_s11 = scalar_lea.vmem %s4585_s14, %s4021_s18 }
 0x3da   : > { %1951 = vrot.lane.b32.xlu0 %v2848_v59, %s3598_s10 }
 0x3de   : > { %v4266_v63 = vld [vmem:[#allocation5 + $0x10] sm:$0xff]  ;;  %v4268_v0 = vld [vmem:[#allocation5 + $0x18] sm:$0xff]  ;;  %v1781_v2 = vld [vmem:[#allocation5] sm:$0xff] }
 0x3df   : > { %v1782_v3 = vld [vmem:[#allocation5 + $0x8] sm:$0xff]  ;;  %v4270_v4 = vld [vmem:[#allocation5 + $0x20] sm:$0xff]  ;;  %v4274_v6 = vld [vmem:[#allocation5 + $0x30] sm:$0xff]  ;;  %v1935_v9 = vadd.f32 %v4181_v25, %v4266_v63  ;;  %v1936_v10 = vadd.f32 %v4189_v30, %v4268_v0  ;;  %v1933_v11 = vadd.f32 %v1781_v2, %v4184_v28 }
 0x3e0   : > { %v4272_v5 = vld [vmem:[#allocation5 + $0x28] sm:$0xff]  ;;  %v4276_v7 = vld [vmem:[#allocation5 + $0x38] sm:$0xff]  ;;  %v4278_v8 = vld [vmem:[#allocation5 + $0x40] sm:$0xff]  ;;  %v1934_v12 = vadd.f32 %v1782_v3, %v4194_v34  ;;  %v1937_v17 = vadd.f32 %v4270_v4, %v4199_v41  ;;  %v1939_v25 = vadd.f32 %v4197_v37, %v4274_v6 }
 0x3e1   : > { %v4286_v13 = vld [vmem:[#allocation5 + $0x48] sm:$0xff]  ;;  %v4288_v14 = vld [vmem:[#allocation5 + $0x50] sm:$0xff]  ;;  %v4290_v15 = vld [vmem:[#allocation5 + $0x58] sm:$0xff]  ;;  %v1938_v18 = vadd.f32 %v4272_v5, %v4207_v48  ;;  %v1940_v28 = vadd.f32 %v4201_v44, %v4276_v7  ;;  %v1941_v34 = vadd.f32 %v4278_v8, %v4213_v58 }
 0x3e2   : > { %v1942_v19 = vadd.f32 %v4286_v13, %v4221_v1  ;;  %v1943_v20 = vadd.f32 %v4211_v54, %v4288_v14  ;;  %v1944_v41 = vadd.f32 %v4215_v61, %v4290_v15 }
 0x44c   : > { %v1952_v30 = vpop.permute.xlu0 %1951 }
 0x44d   : > { %v1956_v48 = vadd.f32 %v1952_v30, %v1935_v9  ;;  %v1957_v23 = vadd.f32 %v1952_v30, %v1936_v10  ;;  %v1954_v26 = vadd.f32 %v1952_v30, %v1933_v11  ;;  %v1955_v37 = vadd.f32 %v1952_v30, %v1934_v12 }
 0x44e   : > { %v1958_v29 = vadd.f32 %v1952_v30, %v1937_v17  ;;  %v1959_v32 = vadd.f32 %v1952_v30, %v1938_v18  ;;  %v1960_v44 = vadd.f32 %v1952_v30, %v1939_v25  ;;  %v1961_v35 = vadd.f32 %v1952_v30, %v1940_v28  ;;  %v3186_v25 = vld [vmem:[%s4046_s5 + $0x8] sm:$0xff]  }
 0x44f   : > { %v1968_v38 = vmax.f32 %v1956_v48, 0.0  ;;  %v1969_v40 = vmax.f32 %v1957_v23, 0.0  ;;  %v1966_v58 = vmax.f32 %v1954_v26, 0.0  ;;  %v1967_v43 = vmax.f32 %v1955_v37, 0.0  ;;  %3005 = vmatprep.subr.bf16.mxu0 %v3186_v25 }
 0x450   : > { %v1970_v46 = vmax.f32 %v1958_v29, 0.0  ;;  %v1971_v1 = vmax.f32 %v1959_v32, 0.0  ;;  %v1972_v50 = vmax.f32 %v1960_v44, 0.0  ;;  %v1973_v55 = vmax.f32 %v1961_v35, 0.0  ;;  %3006 = vmatpush3.bf16.msra.mxu0 %v3186_v25 }
 0x451   : > { %v1979_v54 = vpack.c.bf16 %v1969_v40, %v1968_v38  ;;  %v1978_v57 = vpack.c.bf16 %v1967_v43, %v1966_v58  ;;  %v1962_v61 = vadd.f32 %v1952_v30, %v1941_v34  ;;  %v1963_v59 = vadd.f32 %v1952_v30, %v1942_v19  ;;  %v3187_v19 = vld [vmem:[%s4046_s5] sm:$0xff]  }
 0x452   : > { %v1964_v60 = vadd.f32 %v1952_v30, %v1943_v20  ;;  %v1965_v62 = vadd.f32 %v1952_v30, %v1944_v41  ;;  %v1980_v11 = vpack.c.bf16 %v1971_v1, %v1970_v46  ;;  %v1981_v12 = vpack.c.bf16 %v1973_v55, %v1972_v50  ;;  %3007 = vmatprep.subr.bf16.mxu0 %v3187_v19 }
 0x453   : > { %2003 = vrot.lane.b32.xlu1 %v1979_v54, %s3599_s3  ;;  %2001 = vrot.lane.b32.xlu0 %v1978_v57, %s3599_s3  ;;  %v1974_v9 = vmax.f32 %v1962_v61, 0.0  ;;  %v1975_v10 = vmax.f32 %v1963_v59, 0.0  ;;  %v1793_v28 = vmul.f32 %v1781_v2, %v4235_v24  ;;  %v1794_v34 = vmul.f32 %v1782_v3, %v4239_v31 }
 0x454   : > { %v1976_v17 = vmax.f32 %v1964_v60, 0.0  ;;  %v1977_v18 = vmax.f32 %v1965_v62, 0.0  ;;  %v1795_v48 = vmul.f32 %v4266_v63, %v4233_v22  ;;  %v1796_v23 = vmul.f32 %v4268_v0, %v4237_v27  ;;  %3008 = vmatpush3.bf16.msra.mxu0 %v3187_v19 }
 0x455   : > { %v1982_v30 = vpack.c.bf16 %v1975_v10, %v1974_v9  ;;  %v1805_v41 = vpack.c.bf16 %v1794_v34, %v1793_v28  ;;  %v1797_v26 = vmul.f32 %v4270_v4, %v4243_v36  ;;  %v1798_v24 = vmul.f32 %v4272_v5, %v4247_v42  ;;  %3037 = vmatprep.subr.bf16.mxu0 %v3596_v49 }
 0x456   : > { %v1983_v20 = vpack.c.bf16 %v1977_v18, %v1976_v17  ;;  %v1806_v31 = vpack.c.bf16 %v1796_v23, %v1795_v48  ;;  %v1799_v27 = vmul.f32 %v4274_v6, %v4241_v33  ;;  %v1800_v36 = vmul.f32 %v4276_v7, %v4245_v39  ;;  %v2849_v6 = vld [vmem:[%s1140_s22] ss:$0 sm:$0xff] }
 0x457   : > { %2005 = vrot.lane.b32.xlu1 %v1980_v11, %s3599_s3  ;;  %2007 = vrot.lane.b32.xlu0 %v1981_v12, %s3599_s3  ;;  %v1807_v22 = vpack.c.bf16 %v1798_v24, %v1797_v26  ;;  %v1801_v42 = vmul.f32 %v4278_v8, %v4251_v47  ;;  %v1802_v63 = vmul.f32 %v4286_v13, %v4255_v56 }
 0x458   : > { %3009 = vmatprep.mubr.msk.bf16.mxu0 %vm1354_vm5, %v1805_v41  ;;  %v1808_v0 = vpack.c.bf16 %v1800_v36, %v1799_v27  ;;  %v1803_v3 = vmul.f32 %v4288_v14, %v4249_v45  ;;  %v1804_v33 = vmul.f32 %v4290_v15, %v4253_v53 }
 0x459   : > { %3010 = vmatmul.mubr.msk.bf16.vlgmr.msra.gmra.mxu0 %vm1354_vm5, %v1806_v31  ;;  %v1809_v2 = vpack.c.bf16 %v1802_v63, %v1801_v42 }
 0x45a   : > { %3013 = vmatprep.mubr.msk.bf16.mxu0 %vm1354_vm5, %v1807_v22  ;;  %v1810_v39 = vpack.c.bf16 %v1804_v33, %v1803_v3 }
 0x45b   : > { %2009 = vrot.lane.b32.xlu1 %v1982_v30, %s3599_s3  ;;  %2011 = vrot.lane.b32.xlu0 %v1983_v20, %s3599_s3 }
 0x461   : > { %3014 = vmatmul.mubr.msk.bf16.gmra.mxu0 %vm1354_vm5, %v1808_v0 }
 0x462   : > { %3017 = vmatprep.mubr.msk.bf16.mxu0 %vm1354_vm5, %v1809_v2 }
 0x469   : > { %3018 = vmatmul.mubr.msk.bf16.gmra.mxu0 %vm1354_vm5, %v1810_v39 }
 0x46a   : > { %3041 = vmatprep.mubr.msk.bf16.mxu0 %vm3597_vm4, %v3596_v49 }
 0x4c5   : > { %v2004_v47 = vpop.permute.xlu1 %2003  ;;  %v2002_v56 = vpop.permute.xlu0 %2001 }
 0x4c6   : > { %3025 = vmatprep.mubr.msk.bf16.mxu1 %vm1354_vm5, %v2002_v56 }
 0x4c7   : > { %3026 = vmatmul.mubr.msk.bf16.vlgmr.msra.gmra.mxu1 %vm1354_vm5, %v2004_v47  ;;  %v4365_v47 = vld [vmem:[%s4586_s11] ss:$0 sm:$0xff] }
 0x4c9   : > { %v2006_v4 = vpop.permute.xlu1 %2005  ;;  %v2008_v45 = vpop.permute.xlu0 %2007 }
 0x4ca   : > { %3029 = vmatprep.mubr.msk.bf16.mxu1 %vm1354_vm5, %v2006_v4 }
 0x4cd   : > { %v2010_v53 = vpop.permute.xlu1 %2009  ;;  %v2012_v5 = vpop.permute.xlu0 %2011 }
 0x4cf   : > { %3030 = vmatmul.mubr.msk.bf16.gmra.mxu1 %vm1354_vm5, %v2008_v45 }
 0x4d0   : > { %3033 = vmatprep.mubr.msk.bf16.mxu1 %vm1354_vm5, %v2010_v53 }
 0x4d7   : > { %3034 = vmatmul.mubr.msk.bf16.gmra.mxu1 %vm1354_vm5, %v2012_v5 }
 0x4d8   : > { %3049 = vmatprep.mubr.msk.bf16.mxu1 %vm3597_vm4, %v3596_v49 }
 0x519   : > { %v3011_v46 = vpop.f32.mrf.mxu0 }
 0x51a   : > { %v1895_v5 = vadd.f32 %v3011_v46, %v4365_v47 }
 0x51b   : > { %v1886_v59 = vpop.f32.mrf.mxu0 }
 0x51d   : > { %v3012_v17 = vpop.f32.mrf.mxu0 }
 0x51f   : > { %v1889_v26 = vpop.f32.mrf.mxu0 }
 0x521   : > { %v3015_v2 = vpop.f32.mrf.mxu0 }
 0x523   : > { %v1902_v4 = vpop.f32.mrf.mxu0 }
 0x587   : > { %v3027_v7 = vpop.f32.mrf.mxu1 }
 0x588   : > { %v2086_v8 = vadd.f32 %v3027_v7, %v2849_v6 }
 0x589   : > { %v2077_v13 = vpop.f32.mrf.mxu1 }
 0x58a   : > { %v2860_v14 = vmul.f32 -1.442695, %v2086_v8  ;;  %v2078_v15 = vadd.f32 %v2849_v6, %v2077_v13  ;;  %v3016_v8 = vpop.f32.mrf.mxu0 }
 0x58b   : > { %v3028_v37 = vpop.f32.mrf.mxu1 }
 0x58c   : > { %3192 = vpow2.f32 %v2860_v14  ;;  %v2858_v29 = vmul.f32 -1.442695, %v2078_v15  ;;  %v2089_v32 = vadd.f32 %v3028_v37, %v2849_v6  ;;  %v1887_v37 = vadd.f32 %v4365_v47, %v1886_v59 }
 0x58d   : > { %v2080_v44 = vpop.f32.mrf.mxu1 }
 0x58e   : > { %3194 = vpow2.f32 %v2858_v29  ;;  %v2861_v35 = vmul.f32 -1.442695, %v2089_v32  ;;  %v2081_v38 = vadd.f32 %v2849_v6, %v2080_v44 }
 0x58f   : > { %v3031_v40 = vpop.f32.mrf.mxu1 }
 0x590   : > { %3196 = vpow2.f32 %v2861_v35  ;;  %v2859_v58 = vmul.f32 -1.442695, %v2081_v38  ;;  %v2102_v43 = vadd.f32 %v3031_v40, %v2849_v6  ;;  %v1898_v38 = vadd.f32 %v3012_v17, %v4365_v47  ;;  %v1905_v40 = vpop.f32.mrf.mxu0 }
 0x591   : > { %v2093_v1 = vpop.f32.mrf.mxu1 }
 0x592   : > { %3198 = vpow2.f32 %v2859_v58  ;;  %v2864_v50 = vmul.f32 -1.442695, %v2102_v43  ;;  %v2094_v55 = vadd.f32 %v2849_v6, %v2093_v1 }
 0x593   : > { %v3032_v54 = vpop.f32.mrf.mxu1 }
 0x594   : > { %3200 = vpow2.f32 %v2864_v50  ;;  %v2862_v57 = vmul.f32 -1.442695, %v2094_v55  ;;  %v2105_v61 = vadd.f32 %v3032_v54, %v2849_v6  ;;  %v1890_v50 = vadd.f32 %v4365_v47, %v1889_v26 }
 0x595   : > { %v2096_v60 = vpop.f32.mrf.mxu1  ;;  %v1911_v55 = vadd.f32 %v3015_v2, %v4365_v47 }
 0x596   : > { %3202 = vpow2.f32 %v2862_v57  ;;  %v2865_v62 = vmul.f32 -1.442695, %v2105_v61  ;;  %v2097_v9 = vadd.f32 %v2849_v6, %v2096_v60  ;;  %v3019_v60 = vpop.f32.mrf.mxu0 }
 0x597   : > { %v3035_v10 = vpop.f32.mrf.mxu1 }
 0x598   : > { %3204 = vpow2.f32 %v2865_v62  ;;  %v2863_v11 = vmul.f32 -1.442695, %v2097_v9  ;;  %v2118_v12 = vadd.f32 %v3035_v10, %v2849_v6 }
 0x599   : > { %v3193_v18 = vpop.eup %3192  ;;  %v2109_v25 = vpop.f32.mrf.mxu1 }
 0x59a   : > { %v2162_v28 = vadd.f32 1.0, %v3193_v18  ;;  %3206 = vpow2.f32 %v2863_v11  ;;  %v2868_v34 = vmul.f32 -1.442695, %v2118_v12  ;;  %v2110_v30 = vadd.f32 %v2849_v6, %v2109_v25  ;;  %v1918_v25 = vpop.f32.mrf.mxu0 }
 0x59b   : > { %v3195_v19 = vpop.eup %3194  ;;  %v3036_v20 = vpop.f32.mrf.mxu1  ;;  %v1903_v11 = vadd.f32 %v4365_v47, %v1902_v4  ;;  %v1914_v18 = vadd.f32 %v3016_v8, %v4365_v47 }
 0x59c   : > { %3208 = vrcp.f32 %v2162_v28  ;;  %v2160_v41 = vadd.f32 1.0, %v3195_v19  ;;  %v2866_v48 = vmul.f32 -1.442695, %v2110_v30  ;;  %v2121_v23 = vadd.f32 %v3036_v20, %v2849_v6 }
 0x59d   : > { %v3197_v24 = vpop.eup %3196  ;;  %3210 = vpow2.f32 %v2868_v34  ;;  %v2112_v31 = vpop.f32.mrf.mxu1  ;;  %v1906_v30 = vadd.f32 %v4365_v47, %v1905_v40  ;;  %v1927_v20 = vadd.f32 %v3019_v60, %v4365_v47 }
 0x59e   : > { %3212 = vrcp.f32 %v2160_v41  ;;  %v2163_v22 = vadd.f32 1.0, %v3197_v24  ;;  %v2869_v27 = vmul.f32 -1.442695, %v2121_v23  ;;  %v2113_v36 = vadd.f32 %v2849_v6, %v2112_v31 }
 0x59f   : > { %v3199_v42 = vpop.eup %3198  ;;  %3214 = vpow2.f32 %v2866_v48  ;;  %v3020_v48 = vpop.f32.mrf.mxu0  ;;  %v1919_v24 = vadd.f32 %v4365_v47, %v1918_v25 }
 0x5a0   : > { %3216 = vrcp.f32 %v2163_v22  ;;  %v2161_v63 = vadd.f32 1.0, %v3199_v42  ;;  %v2867_v0 = vmul.f32 -1.442695, %v2113_v36  ;;  %v1930_v42 = vadd.f32 %v3020_v48, %v4365_v47 }
 0x5a1   : > { %v3201_v3 = vpop.eup %3200  ;;  %3218 = vpow2.f32 %v2869_v27  ;;  %v1921_v22 = vpop.f32.mrf.mxu0 }
 0x5a2   : > { %3220 = vrcp.f32 %v2161_v63  ;;  %v2166_v33 = vadd.f32 1.0, %v3201_v3 }
 0x5a3   : > { %v3203_v39 = vpop.eup %3202  ;;  %3222 = vpow2.f32 %v2867_v0 }
 0x5a4   : > { %3224 = vrcp.f32 %v2166_v33  ;;  %v2164_v56 = vadd.f32 1.0, %v3203_v39  ;;  %v1922_v33 = vadd.f32 %v4365_v47, %v1921_v22 }
 0x5a5   : > { %v3205_v45 = vpop.eup %3204 }
 0x5a6   : > { %3226 = vrcp.f32 %v2164_v56  ;;  %v2167_v53 = vadd.f32 1.0, %v3205_v45 }
 0x5a7   : > { %v3207_v6 = vpop.eup %3206 }
 0x5a8   : > { %3228 = vrcp.f32 %v2167_v53  ;;  %v2165_v7 = vadd.f32 1.0, %v3207_v6 }
 0x5a9   : > { %v3209_v13 = vpop.eup %3208 }
 0x5aa   : > { %v3211_v14 = vpop.eup %3210  ;;  %3230 = vrcp.f32 %v2165_v7  ;;  %v2198_v15 = vmul.f32 %v3209_v13, %v1895_v5 }
 0x5ab   : > { %v3213_v29 = vpop.eup %3212  ;;  %v2170_v32 = vadd.f32 1.0, %v3211_v14 }
 0x5ac   : > { %v3215_v44 = vpop.eup %3214  ;;  %2210 = vst.msk [vmem:[#allocation6 + $0x10] sm:$0xff] %vm1354_vm5, %v2198_v15  ;;  %v2196_v35 = vmul.f32 %v3213_v29, %v1887_v37 }
 0x5ad   : > { %v3217_v58 = vpop.eup %3216  ;;  %3232 = vrcp.f32 %v2170_v32  ;;  %v2168_v43 = vadd.f32 1.0, %v3215_v44 }
 0x5ae   : > { %v3219_v46 = vpop.eup %3218  ;;  %2208 = vst.msk [vmem:[#allocation6] sm:$0xff] %vm1354_vm5, %v2196_v35  ;;  %v2199_v1 = vmul.f32 %v3217_v58, %v1898_v38 }
 0x5af   : > { %v3221_v54 = vpop.eup %3220  ;;  %3234 = vrcp.f32 %v2168_v43  ;;  %v2171_v57 = vadd.f32 1.0, %v3219_v46 }
 0x5b0   : > { %v3223_v61 = vpop.eup %3222  ;;  %2211 = vst.msk [vmem:[#allocation6 + $0x18] sm:$0xff] %vm1354_vm5, %v2199_v1  ;;  %v2197_v59 = vmul.f32 %v3221_v54, %v1890_v50 }
 0x5b1   : > { %v3225_v62 = vpop.eup %3224  ;;  %3236 = vrcp.f32 %v2171_v57  ;;  %v2169_v9 = vadd.f32 1.0, %v3223_v61 }
 0x5b2   : > { %2209 = vst.msk [vmem:[#allocation6 + $0x8] sm:$0xff] %vm1354_vm5, %v2197_v59  ;;  %v2202_v10 = vmul.f32 %v3225_v62, %v1911_v55 }
 0x5b3   : > { %v3227_v12 = vpop.eup %3226  ;;  %3238 = vrcp.f32 %v2169_v9  ;;  %v2222_v0 = vld [vmem:[#allocation6 + $0x10] sm:$0xff] }
 0x5b4   : > { %2214 = vst.msk [vmem:[#allocation6 + $0x30] sm:$0xff] %vm1354_vm5, %v2202_v10  ;;  %v2200_v17 = vmul.f32 %v3227_v12, %v1903_v11 }
 0x5b5   : > { %v3229_v28 = vpop.eup %3228  ;;  %v2220_v27 = vld [vmem:[#allocation6] sm:$0xff] }
 0x5b6   : > { %2212 = vst.msk [vmem:[#allocation6 + $0x20] sm:$0xff] %vm1354_vm5, %v2200_v17  ;;  %v2203_v34 = vmul.f32 %v3229_v28, %v1914_v18  ;;  %v2224_v39 = vadd.f32 %v2222_v0, %v2220_v27  ;;  %v2871_v28 = vld [vmem:[%s1146_s7] ss:$0 sm:$0xff] }
 0x5b7   : > { %v3231_v19 = vpop.eup %3230  ;;  %v2223_v5 = vld [vmem:[#allocation6 + $0x18] sm:$0xff] }
 0x5b8   : > { %2215 = vst.msk [vmem:[#allocation6 + $0x38] sm:$0xff] %vm1354_vm5, %v2203_v34  ;;  %v2201_v41 = vmul.f32 %v3231_v19, %v1906_v30  ;;  %v2870_v34 = vld [vmem:[%s1143_s21] ss:$0 sm:$0xff]  ;;  %v3188_v30 = vld [vmem:[%s4079_s4 + $0x8] sm:$0xff]  }
 0x5b9   : > { %v2221_v4 = vld [vmem:[#allocation6 + $0x8] sm:$0xff]  ;;  %3038 = vmatpush3.bf16.msra.mxu0 %v3188_v30 }
 0x5ba   : > { %v3233_v23 = vpop.eup %3232  ;;  %2213 = vst.msk [vmem:[#allocation6 + $0x28] sm:$0xff] %vm1354_vm5, %v2201_v41  ;;  %v2225_v7 = vadd.f32 %v2223_v5, %v2221_v4  ;;  %v3189_v19 = vld [vmem:[%s4079_s4] sm:$0xff]   ;;  %3039 = vmatprep.subr.bf16.mxu0 %v3596_v49 }
 0x5bb   : > { %v2206_v26 = vmul.f32 %v3233_v23, %v1927_v20  ;;  %v2230_v8 = vld [vmem:[#allocation6 + $0x30] sm:$0xff] }
 0x5bc   : > { %v3235_v31 = vpop.eup %3234 }
 0x5bd   : > { %2218 = vst.msk [vmem:[#allocation6 + $0x50] sm:$0xff] %vm1354_vm5, %v2206_v26  ;;  %v2204_v36 = vmul.f32 %v3235_v31, %v1919_v24  ;;  %v2226_v2 = vld [vmem:[#allocation6 + $0x20] sm:$0xff]  ;;  %3040 = vmatpush3.bf16.msra.mxu0 %v3189_v19 }
 0x5be   : > { %v3237_v63 = vpop.eup %3236  ;;  %v2228_v53 = vadd.f32 %v2226_v2, %v2224_v39 }
 0x5bf   : > { %2216 = vst.msk [vmem:[#allocation6 + $0x40] sm:$0xff] %vm1354_vm5, %v2204_v36  ;;  %v2207_v3 = vmul.f32 %v3237_v63, %v1930_v42  ;;  %v2231_v32 = vld [vmem:[#allocation6 + $0x38] sm:$0xff] }
 0x5c0   : > { %v3239_v56 = vpop.eup %3238  ;;  %v2232_v13 = vadd.f32 %v2230_v8, %v2228_v53 }
 0x5c1   : > { %2219 = vst.msk [vmem:[#allocation6 + $0x58] sm:$0xff] %vm1354_vm5, %v2207_v3  ;;  %v2205_v45 = vmul.f32 %v3239_v56, %v1922_v33  ;;  %v2227_v6 = vld [vmem:[#allocation6 + $0x28] sm:$0xff] }
 0x5c2   : > { %v2229_v14 = vadd.f32 %v2227_v6, %v2225_v7  ;;  %v2872_v7 = vld [vmem:[%s1149_s25] ss:$0 sm:$0xff] }
 0x5c3   : > { %2217 = vst.msk [vmem:[#allocation6 + $0x48] sm:$0xff] %vm1354_vm5, %v2205_v45 }
 0x5c4   : > { %v2238_v29 = vld [vmem:[#allocation6 + $0x50] sm:$0xff]  ;;  %v2233_v44 = vadd.f32 %v2231_v32, %v2229_v14 }
 0x5c6   : > { %v2234_v15 = vld [vmem:[#allocation6 + $0x40] sm:$0xff] }
 0x5c7   : > { %v2236_v37 = vadd.f32 %v2234_v15, %v2232_v13 }
 0x5c8   : > { %v2239_v40 = vld [vmem:[#allocation6 + $0x58] sm:$0xff] }
 0x5c9   : > { %v2240_v47 = vadd.f32 %v2238_v29, %v2236_v37 }
 0x5ca   : > { %v2235_v35 = vld [vmem:[#allocation6 + $0x48] sm:$0xff] }
 0x5cb   : > { %2244 = vrot.lane.b32.xlu1 %v2240_v47, %s3598_s10  ;;  %v2237_v38 = vadd.f32 %v2235_v35, %v2233_v44 }
 0x5cd   : > { %v2241_v58 = vadd.f32 %v2239_v40, %v2237_v38 }
 0x5cf   : > { %2246 = vrot.lane.b32.xlu0 %v2241_v58, %s3598_s10 }
 0x63d   : > { %v2245_v43 = vpop.permute.xlu1 %2244 }
 0x63e   : > { %v2250_v46 = vadd.f32 %v2245_v43, %v4175_v16 }
 0x640   : > { %2254 = vrot.lane.b32.xlu1 %v2250_v46, %s3599_s3 }
 0x641   : > { %v2247_v1 = vpop.permute.xlu0 %2246 }
 0x642   : > { %v2251_v50 = vadd.f32 %v2247_v1, %v4178_v21 }
 0x644   : > { %2256 = vrot.lane.b32.xlu0 %v2251_v50, %s3599_s3 }
 0x6b2   : > { %v2255_v55 = vpop.permute.xlu1 %2254 }
 0x6b3   : > { %v2260_v54 = vsel %vm1354_vm5, %v2255_v55, 0.0 }
 0x6b4   : > { %2261 = vadd.xlane.f32.xlu1 %v2260_v54 }
 0x6b6   : > { %v2257_v57 = vpop.permute.xlu0 %2256 }
 0x6b7   : > { %v2263_v61 = vsel %vm1354_vm5, %v2257_v57, 0.0 }
 0x6b8   : > { %2264 = vadd.xlane.f32.xlu0 %v2263_v61 }
 0x73d   : > { %v2262_v59 = vpop.xlane.xlu1 %2261 }
 0x73e   : > { %v2267_v60 = vmul.f32 0.03125, %v2262_v59 }
 0x740   : > { %v2269_v62 = vsub.f32 %v2250_v46, %v2267_v60 }
 0x741   : > { %v2265_v16 = vpop.xlane.xlu0 %2264 }
 0x742   : > { %v2268_v9 = vmul.f32 0.03125, %v2265_v16  ;;  %v2271_v10 = vmul.f32 %v2269_v62, %v2269_v62 }
 0x744   : > { %v2270_v21 = vsub.f32 %v2251_v50, %v2268_v9  ;;  %2275 = vrot.lane.b32.xlu0 %v2271_v10, %s3599_s3 }
 0x746   : > { %v2272_v11 = vmul.f32 %v2270_v21, %v2270_v21 }
 0x748   : > { %2277 = vrot.lane.b32.xlu1 %v2272_v11, %s3599_s3 }
 0x7b6   : > { %v2276_v12 = vpop.permute.xlu0 %2275 }
 0x7b7   : > { %v2281_v17 = vsel %vm1354_vm5, %v2276_v12, 0.0 }
 0x7b8   : > { %2282 = vadd.xlane.f32.xlu1 %v2281_v17 }
 0x7ba   : > { %v2278_v18 = vpop.permute.xlu1 %2277 }
 0x7bb   : > { %v2284_v25 = vsel %vm1354_vm5, %v2278_v18, 0.0 }
 0x7bc   : > { %2285 = vadd.xlane.f32.xlu0 %v2284_v25 }
 0x7c9   : > { %2312 = vrot.lane.b32.xlu1 %v2871_v28, %s3598_s10 }
 0x7d2   : > { %2301 = vrot.lane.b32.xlu0 %v2870_v34, %s3598_s10  ;;  %s4589_s10 = sld [smem:[#allocation54_spill]] }
 0x7d8   : > { %v3190_v36 = vld [vmem:[%s4589_s10 + $0x8] sm:$0xff]   ;;  %v3191_v2 = vld [vmem:[%s4589_s10] sm:$0xff]  }
 0x7d9   : > { %3046 = vmatpush3.bf16.msra.mxu1 %v3190_v36 }
 0x7da   : > { %3047 = vmatprep.subr.bf16.mxu1 %v3596_v49 }
 0x7dd   : > { %3048 = vmatpush3.bf16.msra.mxu1 %v3191_v2 }
 0x841   : > { %v2283_v20 = vpop.xlane.xlu1 %2282 }
 0x842   : > { %v2287_v41 = vmul.f32 0.03125, %v2283_v20 }
 0x844   : > { %v2289_v48 = vadd.f32 1e-05, %v2287_v41 }
 0x845   : > { %v2286_v23 = vpop.xlane.xlu0 %2285  ;;  %v2313_v0 = vpop.permute.xlu1 %2312 }
 0x846   : > { %3240 = vrsqrt.f32 %v2289_v48  ;;  %v2288_v26 = vmul.f32 0.03125, %v2286_v23 }
 0x848   : > { %v2290_v24 = vadd.f32 1e-05, %v2288_v26 }
 0x849   : > { %v2302_v22 = vpop.permute.xlu0 %2301 }
 0x84a   : > { %3242 = vrsqrt.f32 %v2290_v24 }
 0x853   : > { %v3241_v31 = vpop.eup %3240 }
 0x854   : > { %v2293_v27 = vmul.f32 %v3241_v31, %v2269_v62 }
 0x856   : > { %v2304_v42 = vmul.f32 %v2302_v22, %v2293_v27 }
 0x857   : > { %v3243_v63 = vpop.eup %3242 }
 0x858   : > { %v2294_v3 = vmul.f32 %v3243_v63, %v2270_v21  ;;  %v2315_v39 = vadd.f32 %v2313_v0, %v2304_v42 }
 0x85a   : > { %v2305_v33 = vmul.f32 %v2302_v22, %v2294_v3  ;;  %v2317_v4 = vmax.f32 %v2315_v39, 0.0 }
 0x85c   : > { %v2316_v56 = vadd.f32 %v2313_v0, %v2305_v33 }
 0x85e   : > { %v2318_v45 = vmax.f32 %v2316_v56, 0.0 }
 0x860   : > { %v2319_v53 = vpack.c.bf16 %v2318_v45, %v2317_v4 }
 0x862   : > { %2332 = vrot.lane.b32.xlu1 %v2319_v53, %s3599_s3  ;;  %s4591_s3 = sld [smem:[#allocation55_spill]] }
 0x868   : > { %v2876_v29 = vld [vmem:[%s4591_s3] ss:$0 sm:$0xff] }
 0x8d4   : > { %v2333_v5 = vpop.permute.xlu1 %2332 }
 0x8d5   : > { %3042 = vmatmul.mubr.msk.bf16.vlgmr.msra.gmra.mxu0 %vm1354_vm5, %v2333_v5 }
 0x995   : > { %v2383_v6 = vpop.f32.mrf.mxu0 }
 0x996   : > { %v2384_v13 = vadd.f32 %v2872_v7, %v2383_v6 }
 0x997   : > { %v3043_v8 = vpop.f32.mrf.mxu0 }
 0x999   : > { %v2386_v49 = vpop.f32.mrf.mxu0 }
 0x99a   : > { %v2387_v14 = vadd.f32 %v2872_v7, %v2386_v49 }
 0x99b   : > { %v3044_v15 = vpop.f32.mrf.mxu0 }
 0x99c   : > { %v2390_v37 = vpack.c.bf16 %v2387_v14, %v2384_v13 }
 0x99e   : > { %3050 = vmatmul.mubr.msk.bf16.vlgmr.msra.gmra.mxu1 %vm1354_vm5, %v2390_v37 }
 0xa5e   : > { %v2451_v32 = vpop.f32.mrf.mxu1 }
 0xa5f   : > { %v2452_v47 = vadd.f32 %v2876_v29, %v2451_v32 }
 0xa60   : > { %v3051_v44 = vpop.f32.mrf.mxu1 }
 0xa61   : > { %v2458_v35 = vadd.f32 %v2452_v47, %v4149_v51 }
 0xa62   : > { %v2454_v38 = vpop.f32.mrf.mxu1 }
 0xa63   : > { %2460 = vst.msk [vmem:[#allocation3] sm:$0xff] %vm1354_vm5, %v2458_v35  ;;  %v2455_v40 = vadd.f32 %v2876_v29, %v2454_v38  ;;  %2465 = sbr.rel (%p2880_p13) target bundleno = 2665 (0xa69), region = 167 }
 0xa64   : > { %v3052_v58 = vpop.f32.mrf.mxu1 }
 0xa65   : > { %v2459_v43 = vadd.f32 %v2455_v40, %v4151_v52 }
 0xa67   : > { %2461 = vst.msk [vmem:[#allocation3 + $0x8] sm:$0xff] %vm1354_vm5, %v2459_v43 }
 0xa68   : > { %2466 = vst.msk [vmem:[#allocation21] sm:$0xff] %vm1354_vm5, %v2458_v35  ;;  %2467 = vst.msk [vmem:[#allocation21 + $0x8] sm:$0xff] %vm1354_vm5, %v2459_v43 }
 0xa69 PF: > { %p3119_p2 = scmp.eq.s32.totalorder %s3755_s19, 1  ;;  %s3600_s18 = smov [#allocation21]  }
 0xa6a   : > { %s2474_s25 = sshll.u32 %s3600_s18, 4  ;;  %s2475_s25 = int_to_ptr.vmem [resolvable:$true] %s2474_s25 }
 0xa6b   : > { %s3500_s20 = scalar_lea.vmem %s2475_s25, 256  ;;  %p3507_p5 = scmp.lt.s32.totalorder %s2475_s25, %s2475_s25 }
 0xa6c   : > { %p3501_p3 = scmp.ne.s32.totalorder %s2475_s25, %s3500_s20  ;;  %p3508_p11 = scmp.lt.s32.totalorder %s3500_s20, %s3500_s20 }
 0xa6e   : > { %p3502_p6 = pnand %p3501_p3, %p3119_p2  ;;  %p3509_p4 = por %p3508_p11, %p3507_p5 }
 0xa70   : > { %p3503_p7 = pneg %p3502_p6 }
 0xa72   : > { %p3510_p9 = pnand %p3509_p4, %p3503_p7 }
 0xa74   : > { %3513 = shalt.err (!%p3510_p9)
}
 0xa75   : > { %s3601_s27 = smov 128   ;;  %s3602_s5 = smov 8  }
 0xa76   : > { %s4592_s22 = sld [smem:[#allocation56_spill]] }
 0xa7c   : > { %3082 = dma.vmem_to_hbm [thread:$0]  (%p3119_p2), %s2475_s25, 256, %s4592_s22, [#allocation11], %s3601_s27, %s3601_s27, %s3602_s5  }
 0xa7d   : > { %3559 = dma.done.wait (%p3119_p2), [#allocation11], 256  }
 0xa7e   : > { %3561 = vsyncadd (%p3119_p2), [#allocation11], 4294967040 }
 0xa7f PF: > { %s4593_s26 = sld [smem:[#allocation29_spill]] }
 0xa80   : > { %s4594_s30 = sld [smem:[#allocation27_spill]] }
 0xa81   : > { %s4595_s7 = sld [smem:[#allocation28_spill]] }
 0xa82   : > { %s4596_s3 = sld [smem:[#allocation30_spill]] }
 0xa85   : > { %p39_p1 = scmp.ge.s32.totalorder %s4593_s26, 4  }
 0xa87   :  { %41 = sbr.rel (!%p39_p1) target bundleno = 41 (0x29), region = 287 }
 0xa8c   :  { %2490 = vsyncpa [#allocation10], 1 }
 0xa8d   :  { %2492 = vsyncpa [#allocation10 + $0x1], 1 }
 0xa8e   :  { %2493 = vsyncpa [#allocation13], 1 }
 0xa8f   :  { %2494 = vsyncpa [#allocation11], 1 }
 0xa90   :  { %2496 = vsyncpa [#allocation11 + $0x1], 1 }

</bundles_post_ra>
